<compile_context>
chip_gen: v7x
topology: tpu7x:2x2x1
jax: 0.10.0
libtpu: 0.0.40
codegen_flags: <defaults>
</compile_context>

<pallas_src>
import functools
import math

import jax
import jax.numpy as jnp
from jax.experimental import pallas as pl
from jax.experimental.pallas import tpu as pltpu

KH = KW = 3          # kernel size
C_RGB = 3            # channels of img_prev / residual
C_IN = 6             # concat(img_prev[3], residual[3])
C_MID = 48
C_OUT = 3
GRP = 8              # sublane-aligned rows per tap group in the stacked RHS
# tap order matches HWIO weight layout flattened as (KH*KW, Cin, Cout)
TAPS = tuple((ky, kx) for ky in (-1, 0, 1) for kx in (-1, 0, 1))
CENTER = TAPS.index((0, 0))
N_TAPS = len(TAPS)                 # 9
K_RHS = N_TAPS * GRP               # 72

_BYTES_PER_LANE = 1200             # conservative live-f32-VMEM estimate per lane


def _roll_lanes(v, off, m):
    """Returns y with y[:, p] = v[:, (p + off) mod m] for a static offset."""
    if off % m == 0:
        return v
    # pltpu.roll follows jnp.roll semantics: roll(x, s)[i] = x[(i - s) mod m].
    return pltpu.roll(v, (-off) % m, 1)


def combiner_kernel(img_ref, res_ref, w1_ref, b1_ref, alpha_ref, w2_ref,
                    b2_ref, out_ref, rhs_ref, *, img_h, img_w):
    # img_ref, res_ref : (3, M)   channel-major inputs, M = block_batch*H*W
    # w1_ref           : (48, 72) conv1 weights, col = 8*tap + cin (cin 6,7 = 0)
    # b1_ref           : (48, 1)
    # alpha_ref        : (1,) SMEM  PReLU slope (num_parameters=1)
    # w2_ref           : (72, 48) conv2 weights, row = 8*tap + cout (rows 3..7 = 0)
    # b2_ref           : (3, 1)
    # out_ref          : (3, M)   channel-major output (lane-dense)
    # rhs_ref          : (72, M)  VMEM scratch: tap-stacked conv1 RHS
    m = out_ref.shape[1]

    # ---- destination pixel row/col along the flat lane axis ----------------
    p = jax.lax.broadcasted_iota(jnp.int32, (1, m), 1)
    if img_w & (img_w - 1) == 0:                       # power-of-two fast path
        col = p & (img_w - 1)
        q = p >> (img_w.bit_length() - 1)
    else:
        col = p % img_w
        q = p // img_w
    row = (q & (img_h - 1)) if (img_h & (img_h - 1)) == 0 else (q % img_h)

    # Per-tap validity masks: source pixel (row+ky, col+kx) must lie inside the
    # image (reproduces the 1-pixel zero padding); also kills every contribution
    # that a flat roll wraps across image / batch-block boundaries.
    masks = []
    for ky, kx in TAPS:
        mk = None
        if ky == -1:
            mk = row >= 1
        elif ky == 1:
            mk = row <= img_h - 2
        if kx == -1:
            c_ok = col >= 1
            mk = c_ok if mk is None else jnp.logical_and(mk, c_ok)
        elif kx == 1:
            c_ok = col <= img_w - 2
            mk = c_ok if mk is None else jnp.logical_and(mk, c_ok)
        masks.append(mk)

    # ---- build tap-stacked conv1 RHS in VMEM scratch ------------------------
    # rows 8t+{0..2} = img tap t, 8t+{3..5} = residual tap t, 8t+{6,7} = 0.
    # Every store is a full (8, M) block at a tile-aligned sublane offset; the
    # zero pad rows are part of the stored value, so no scratch init is needed
    # (safe under megacore grid sharding).
    x = jnp.concatenate(
        [img_ref[...], res_ref[...], jnp.zeros((GRP - C_IN, m), jnp.float32)],
        axis=0)                                                     # (8, M)
    for t, (ky, kx) in enumerate(TAPS):
        x_s = _roll_lanes(x, ky * img_w + kx, m)
        if masks[t] is not None:
            x_s = jnp.where(masks[t], x_s, 0.0)
        rhs_ref[GRP * t:GRP * (t + 1), :] = x_s

    # ---- conv1: 6 -> 48, 3x3, pad=1 as ONE MXU matmul -----------------------
    mm_dtype = w1_ref.dtype
    pre = jnp.dot(w1_ref[...], rhs_ref[...].astype(mm_dtype),
                  preferred_element_type=jnp.float32) + b1_ref[...]  # (48, M)

    # ---- PReLU (single shared slope from SMEM) ------------------------------
    alpha = alpha_ref[0]
    hidden = jnp.where(pre >= 0.0, pre, pre * alpha)                 # (48, M)

    # ---- conv2: 48 -> 3, 3x3, pad=1 (one stacked matmul, 8-row tap groups) ---
    parts = jnp.dot(w2_ref[...], hidden.astype(w2_ref.dtype),
                    preferred_element_type=jnp.float32)              # (72, M)
    acc2 = parts[GRP * CENTER:GRP * CENTER + C_OUT, :]   # centre tap: no roll/mask
    for t, (ky, kx) in enumerate(TAPS):
        if t == CENTER:
            continue
        pt = _roll_lanes(parts[GRP * t:GRP * t + C_OUT, :], ky * img_w + kx, m)
        acc2 = acc2 + jnp.where(masks[t], pt, 0.0)

    # ---- sigmoid + lane-dense store -----------------------------------------
    out = jax.nn.sigmoid(acc2 + b2_ref[...])                         # (3, M)
    out_ref[...] = out.astype(out_ref.dtype)


def _vmem_budget_bytes():
    """Generation-aware VMEM budget (v7x: 64 MiB/core, v5e/v6e: 128 MiB)."""
    try:
        info = pltpu.get_tpu_info()
        cap = int(getattr(info, "vmem_capacity_bytes", 0)) or (64 << 20)
    except Exception:
        cap = 64 << 20                       # conservative fallback (v7x size)
    return min(int(cap * 0.8), 100 << 20)


def _pick_blocking(n, hw, requested):
    """Pick images-per-block so M=bb*hw is a multiple of 128, fits VMEM, and
    (when the batch allows) the grid keeps >=2 blocks for v7x's 2 TensorCores."""
    g = 128 // math.gcd(hw, 128)                      # bb must be a multiple of g
    budget = _vmem_budget_bytes()
    max_lanes = max(128, (budget // _BYTES_PER_LANE) // 128 * 128)
    bb_vmem = max(1, max_lanes // hw)
    bb_n = ((n + g - 1) // g) * g                     # no point exceeding the batch
    if requested is None:
        target = n if n <= 2 * g else (n + 1) // 2    # keep >=2 grid blocks
        bb = min(bb_vmem, target)
    else:
        bb = min(requested, bb_vmem)
    bb = max(g, (bb // g) * g)
    bb = min(bb, bb_n)
    n_blocks = (n + bb - 1) // bb
    return bb, n_blocks


def _prep_params(params, mm_dtype):
    """Reshape conv weights into the lane-dense stacked matrices the kernel uses."""
    w1, b1, alpha, w2, b2 = params
    # conv1 HWIO (3,3,6,48) -> (48, 72); column 8*t + cin, cin 6..7 zero-padded.
    w1r = jnp.transpose(w1.reshape(KH * KW, C_IN, C_MID), (0, 2, 1))     # (9,48,6)
    w1p = jnp.zeros((KH * KW, C_MID, GRP), w1.dtype).at[:, :, :C_IN].set(w1r)
    w1_mat = jnp.transpose(w1p, (1, 0, 2)).reshape(C_MID, K_RHS)         # (48,72)
    # conv2 HWIO (3,3,48,3) -> (72, 48); row 8*t + cout, rows 3..7 zero.
    w2r = jnp.transpose(w2.reshape(KH * KW, C_MID, C_OUT), (0, 2, 1))    # (9,3,48)
    w2p = jnp.zeros((KH * KW, GRP, C_MID), w2.dtype).at[:, :C_OUT, :].set(w2r)
    w2_mat = w2p.reshape(K_RHS, C_MID)                                   # (72,48)
    return (w1_mat.astype(mm_dtype), b1.reshape(C_MID, 1).astype(jnp.float32),
            alpha.reshape(1).astype(jnp.float32),
            w2_mat.astype(mm_dtype), b2.reshape(C_OUT, 1).astype(jnp.float32))


def outputs_combiner(img_prev, residual, params, *, block_batch=None,
                     matmul_dtype=jnp.float32):
    """img_prev, residual: (N, H, W, 3) float32 (NHWC). Returns (N, H, W, 3).

    matmul_dtype=jnp.bfloat16 uses bf16 MXU operands with f32 accumulation
    (faster on all TPU generations, ~1e-2 abs tolerance vs the f32 reference).
    """
    n, h, w, _ = img_prev.shape
    hw = h * w
    bb, n_blocks = _pick_blocking(n, hw, block_batch)
    n_pad = bb * n_blocks
    m = bb * hw                                   # lanes per block (mult of 128)

    def to_channel_major(a):                      # (N,H,W,3) -> (3, N_pad*H*W)
        if n_pad != n:
            a = jnp.pad(a, ((0, n_pad - n), (0, 0), (0, 0), (0, 0)))
        return jnp.transpose(a, (3, 0, 1, 2)).reshape(C_RGB, n_pad * hw)

    img_cm = to_channel_major(img_prev)
    res_cm = to_channel_major(residual)
    w1_mat, b1r, alphar, w2_mat, b2r = _prep_params(params, matmul_dtype)

    kernel = functools.partial(combiner_kernel, img_h=h, img_w=w)

    out_cm = pl.pallas_call(
        kernel,
        out_shape=jax.ShapeDtypeStruct((C_OUT, n_pad * hw), img_prev.dtype),
        grid_spec=pltpu.PrefetchScalarGridSpec(
            num_scalar_prefetch=0,
            grid=(n_blocks,),
            in_specs=[
                pl.BlockSpec((C_RGB, m), lambda i: (0, i)),            # img
                pl.BlockSpec((C_RGB, m), lambda i: (0, i)),            # residual
                pl.BlockSpec((C_MID, K_RHS), lambda i: (0, 0)),        # w1 (48,72)
                pl.BlockSpec((C_MID, 1), lambda i: (0, 0)),            # b1
                pl.BlockSpec(memory_space=pltpu.MemorySpace.SMEM),     # alpha
                pl.BlockSpec((K_RHS, C_MID), lambda i: (0, 0)),        # w2 (72,48)
                pl.BlockSpec((C_OUT, 1), lambda i: (0, 0)),            # b2
            ],
            out_specs=pl.BlockSpec((C_OUT, m), lambda i: (0, i)),
            scratch_shapes=[pltpu.VMEM((K_RHS, m), jnp.float32)],      # stacked RHS
        ),
        compiler_params=pltpu.CompilerParams(
            dimension_semantics=("parallel",),
            vmem_limit_bytes=_vmem_budget_bytes()),
    )(img_cm, res_cm, w1_mat, b1r, alphar, w2_mat, b2r)

    out = out_cm.reshape(C_OUT, n_pad, h, w).transpose(1, 2, 3, 0)
    return out[:n]


def reference(img_prev, residual, params):
    """Pure-JAX reference (mirrors the PyTorch forward, NHWC/HWIO)."""
    w1, b1, alpha, w2, b2 = params
    x = jnp.concatenate([img_prev, residual], axis=-1)
    y = jax.lax.conv_general_dilated(
        x, w1, (1, 1), "SAME",
        dimension_numbers=("NHWC", "HWIO", "NHWC")) + b1
    y = jnp.where(y >= 0.0, y, alpha * y)          # PReLU, single parameter
    y = jax.lax.conv_general_dilated(
        y, w2, (1, 1), "SAME",
        dimension_numbers=("NHWC", "HWIO", "NHWC")) + b2
    return jax.nn.sigmoid(y)


def init_params(key):
    """Deterministic synthetic parameters matching the module's shapes."""
    k1, k2, k3, k4 = jax.random.split(key, 4)
    # conv1: PyTorch (48, 6, 3, 3) -> HWIO (3, 3, 6, 48)
    w1 = jax.random.normal(k1, (KH, KW, C_IN, C_MID), jnp.float32) * 0.1
    b1 = jax.random.normal(k2, (C_MID,), jnp.float32) * 0.05
    alpha = jnp.asarray([0.25], jnp.float32)       # nn.PReLU default init
    # conv2: PyTorch (3, 48, 3, 3) -> HWIO (3, 3, 48, 3)
    w2 = jax.random.normal(k3, (KH, KW, C_MID, C_OUT), jnp.float32) * 0.1
    b2 = jax.random.normal(k4, (C_OUT,), jnp.float32) * 0.05
    return (w1, b1, alpha, w2, b2)


if __name__ == "__main__":
    key = jax.random.PRNGKey(0)
    kp, kr, kparam = jax.random.split(key, 3)

    N, H, W = 4, 16, 16
    img_prev = jax.random.normal(kp, (N, H, W, 3), jnp.float32)
    residual = jax.random.normal(kr, (N, H, W, 3), jnp.float32)
    params = init_params(kparam)

    ref = jax.block_until_ready(reference(img_prev, residual, params))

    # f32 MXU-operand path (auto blocking: 2 images/block -> 2 grid blocks).
    out = jax.block_until_ready(outputs_combiner(img_prev, residual, params))
    assert out.shape == (N, H, W, 3)
    err = float(jnp.max(jnp.abs(out - ref)))
    assert err < 5e-4, f"f32 mismatch vs JAX reference: {err}"

    # bf16 MXU-operand path (f32 accumulation) -- looser tolerance by design.
    out_bf16 = jax.block_until_ready(
        outputs_combiner(img_prev, residual, params, matmul_dtype=jnp.bfloat16))
    err_bf16 = float(jnp.max(jnp.abs(out_bf16 - ref)))
    assert err_bf16 < 5e-2, f"bf16 mismatch vs JAX reference: {err_bf16}"

    print("KERNEL_OK")
</pallas_src>

<mosaic_0001>
module attributes {stable_mosaic.version = 11 : i64} {
  func.func @combiner_kernel(%arg0: i32, %arg1: memref<3x512xf32, #tpu.memory_space<vmem>>, %arg2: memref<3x512xf32, #tpu.memory_space<vmem>>, %arg3: memref<48x72xf32, #tpu.memory_space<vmem>>, %arg4: memref<48x1xf32, #tpu.memory_space<vmem>>, %arg5: memref<1xf32, #tpu.memory_space<smem>>, %arg6: memref<72x48xf32, #tpu.memory_space<vmem>>, %arg7: memref<3x1xf32, #tpu.memory_space<vmem>>, %arg8: memref<3x512xf32, #tpu.memory_space<vmem>>, %arg9: memref<72x512xf32, #tpu.memory_space<vmem>>) attributes {dimension_semantics = [#tpu.dimension_semantics<parallel>], iteration_bounds = array<i64: 2>, scalar_prefetch = 0 : i64, scratch_operands = 1 : i64, tpu.core_type = #tpu.core_type<tc>, window_params = [{transform_indices = @transform_0, window_bounds = array<i64: 3, 512>}, {transform_indices = @transform_1, window_bounds = array<i64: 3, 512>}, {pipeline_mode = #tpu.pipeline_mode<synchronous>, transform_indices = @transform_2, window_bounds = array<i64: 48, 72>}, {pipeline_mode = #tpu.pipeline_mode<synchronous>, transform_indices = @transform_3, window_bounds = array<i64: 48, 1>}, {transform_indices = @transform_4, window_bounds = array<i64: 1>}, {pipeline_mode = #tpu.pipeline_mode<synchronous>, transform_indices = @transform_5, window_bounds = array<i64: 72, 48>}, {pipeline_mode = #tpu.pipeline_mode<synchronous>, transform_indices = @transform_6, window_bounds = array<i64: 3, 1>}, {transform_indices = @transform_7, window_bounds = array<i64: 3, 512>}]} {
    %0 = tpu.iota {dimensions = array<i32: 1>} : vector<1x512xi32>
    %c15_i32 = arith.constant 15 : i32
    %1 = vector.broadcast %c15_i32 : i32 to vector<1x512xi32>
    %2 = arith.andi %0, %1 : vector<1x512xi32>
    %c4_i32 = arith.constant 4 : i32
    %3 = vector.broadcast %c4_i32 : i32 to vector<1x512xi32>
    %4 = arith.shrsi %0, %3 : vector<1x512xi32>
    %c15_i32_0 = arith.constant 15 : i32
    %5 = vector.broadcast %c15_i32_0 : i32 to vector<1x512xi32>
    %6 = arith.andi %4, %5 : vector<1x512xi32>
    %c1_i32 = arith.constant 1 : i32
    %7 = vector.broadcast %c1_i32 : i32 to vector<1x512xi32>
    %8 = arith.cmpi sge, %6, %7 : vector<1x512xi32>
    %c1_i32_1 = arith.constant 1 : i32
    %9 = vector.broadcast %c1_i32_1 : i32 to vector<1x512xi32>
    %10 = arith.cmpi sge, %2, %9 : vector<1x512xi32>
    %11 = arith.andi %8, %10 : vector<1x512xi1>
    %c1_i32_2 = arith.constant 1 : i32
    %12 = vector.broadcast %c1_i32_2 : i32 to vector<1x512xi32>
    %13 = arith.cmpi sge, %6, %12 : vector<1x512xi32>
    %c1_i32_3 = arith.constant 1 : i32
    %14 = vector.broadcast %c1_i32_3 : i32 to vector<1x512xi32>
    %15 = arith.cmpi sge, %6, %14 : vector<1x512xi32>
    %c14_i32 = arith.constant 14 : i32
    %16 = vector.broadcast %c14_i32 : i32 to vector<1x512xi32>
    %17 = arith.cmpi sle, %2, %16 : vector<1x512xi32>
    %18 = arith.andi %15, %17 : vector<1x512xi1>
    %c1_i32_4 = arith.constant 1 : i32
    %19 = vector.broadcast %c1_i32_4 : i32 to vector<1x512xi32>
    %20 = arith.cmpi sge, %2, %19 : vector<1x512xi32>
    %c14_i32_5 = arith.constant 14 : i32
    %21 = vector.broadcast %c14_i32_5 : i32 to vector<1x512xi32>
    %22 = arith.cmpi sle, %2, %21 : vector<1x512xi32>
    %c14_i32_6 = arith.constant 14 : i32
    %23 = vector.broadcast %c14_i32_6 : i32 to vector<1x512xi32>
    %24 = arith.cmpi sle, %6, %23 : vector<1x512xi32>
    %c1_i32_7 = arith.constant 1 : i32
    %25 = vector.broadcast %c1_i32_7 : i32 to vector<1x512xi32>
    %26 = arith.cmpi sge, %2, %25 : vector<1x512xi32>
    %27 = arith.andi %24, %26 : vector<1x512xi1>
    %c14_i32_8 = arith.constant 14 : i32
    %28 = vector.broadcast %c14_i32_8 : i32 to vector<1x512xi32>
    %29 = arith.cmpi sle, %6, %28 : vector<1x512xi32>
    %c14_i32_9 = arith.constant 14 : i32
    %30 = vector.broadcast %c14_i32_9 : i32 to vector<1x512xi32>
    %31 = arith.cmpi sle, %6, %30 : vector<1x512xi32>
    %c14_i32_10 = arith.constant 14 : i32
    %32 = vector.broadcast %c14_i32_10 : i32 to vector<1x512xi32>
    %33 = arith.cmpi sle, %2, %32 : vector<1x512xi32>
    %34 = arith.andi %31, %33 : vector<1x512xi1>
    %c0 = arith.constant 0 : index
    %c0_11 = arith.constant 0 : index
    %35 = vector.load %arg1[%c0, %c0_11] : memref<3x512xf32, #tpu.memory_space<vmem>>, vector<3x512xf32>
    %c0_12 = arith.constant 0 : index
    %c0_13 = arith.constant 0 : index
    %36 = vector.load %arg2[%c0_12, %c0_13] : memref<3x512xf32, #tpu.memory_space<vmem>>, vector<3x512xf32>
    %cst = arith.constant 0.000000e+00 : f32
    %37 = vector.broadcast %cst : f32 to vector<2x512xf32>
    %38 = tpu.concatenate %35, %36, %37 in 0 : vector<3x512xf32>, vector<3x512xf32>, vector<2x512xf32> -> vector<8x512xf32>
    %c17_i32 = arith.constant 17 : i32
    %39 = tpu.dynamic_rotate %38 by %c17_i32 dim 1 : vector<8x512xf32>, i32 -> vector<8x512xf32>
    %cst_14 = arith.constant 0.000000e+00 : f32
    %40 = vector.shape_cast %11 : vector<1x512xi1> to vector<1x512xi1>
    %41 = vector.broadcast %40 : vector<1x512xi1> to vector<8x512xi1>
    %42 = vector.broadcast %cst_14 : f32 to vector<8x512xf32>
    %43 = arith.select %41, %39, %42 : vector<8x512xi1>, vector<8x512xf32>
    %c0_15 = arith.constant 0 : index
    %c0_16 = arith.constant 0 : index
    %44 = vector.load %arg9[%c0_15, %c0_16] : memref<72x512xf32, #tpu.memory_space<vmem>>, vector<8x512xf32>
    tpu.vector_store %arg9[%c0_15, %c0_16], %43 {strides = array<i32>} : memref<72x512xf32, #tpu.memory_space<vmem>>, vector<8x512xf32>,
    %c16_i32 = arith.constant 16 : i32
    %45 = tpu.dynamic_rotate %38 by %c16_i32 dim 1 : vector<8x512xf32>, i32 -> vector<8x512xf32>
    %cst_17 = arith.constant 0.000000e+00 : f32
    %46 = vector.shape_cast %13 : vector<1x512xi1> to vector<1x512xi1>
    %47 = vector.broadcast %46 : vector<1x512xi1> to vector<8x512xi1>
    %48 = vector.broadcast %cst_17 : f32 to vector<8x512xf32>
    %49 = arith.select %47, %45, %48 : vector<8x512xi1>, vector<8x512xf32>
    %c8 = arith.constant 8 : index
    %c0_18 = arith.constant 0 : index
    %50 = vector.load %arg9[%c8, %c0_18] : memref<72x512xf32, #tpu.memory_space<vmem>>, vector<8x512xf32>
    tpu.vector_store %arg9[%c8, %c0_18], %49 {strides = array<i32>} : memref<72x512xf32, #tpu.memory_space<vmem>>, vector<8x512xf32>,
    %c15_i32_19 = arith.constant 15 : i32
    %51 = tpu.dynamic_rotate %38 by %c15_i32_19 dim 1 : vector<8x512xf32>, i32 -> vector<8x512xf32>
    %cst_20 = arith.constant 0.000000e+00 : f32
    %52 = vector.shape_cast %18 : vector<1x512xi1> to vector<1x512xi1>
    %53 = vector.broadcast %52 : vector<1x512xi1> to vector<8x512xi1>
    %54 = vector.broadcast %cst_20 : f32 to vector<8x512xf32>
    %55 = arith.select %53, %51, %54 : vector<8x512xi1>, vector<8x512xf32>
    %c16 = arith.constant 16 : index
    %c0_21 = arith.constant 0 : index
    %56 = vector.load %arg9[%c16, %c0_21] : memref<72x512xf32, #tpu.memory_space<vmem>>, vector<8x512xf32>
    tpu.vector_store %arg9[%c16, %c0_21], %55 {strides = array<i32>} : memref<72x512xf32, #tpu.memory_space<vmem>>, vector<8x512xf32>,
    %c1_i32_22 = arith.constant 1 : i32
    %57 = tpu.dynamic_rotate %38 by %c1_i32_22 dim 1 : vector<8x512xf32>, i32 -> vector<8x512xf32>
    %cst_23 = arith.constant 0.000000e+00 : f32
    %58 = vector.shape_cast %20 : vector<1x512xi1> to vector<1x512xi1>
    %59 = vector.broadcast %58 : vector<1x512xi1> to vector<8x512xi1>
    %60 = vector.broadcast %cst_23 : f32 to vector<8x512xf32>
    %61 = arith.select %59, %57, %60 : vector<8x512xi1>, vector<8x512xf32>
    %c24 = arith.constant 24 : index
    %c0_24 = arith.constant 0 : index
    %62 = vector.load %arg9[%c24, %c0_24] : memref<72x512xf32, #tpu.memory_space<vmem>>, vector<8x512xf32>
    tpu.vector_store %arg9[%c24, %c0_24], %61 {strides = array<i32>} : memref<72x512xf32, #tpu.memory_space<vmem>>, vector<8x512xf32>,
    %c32 = arith.constant 32 : index
    %c0_25 = arith.constant 0 : index
    %63 = vector.load %arg9[%c32, %c0_25] : memref<72x512xf32, #tpu.memory_space<vmem>>, vector<8x512xf32>
    tpu.vector_store %arg9[%c32, %c0_25], %38 {strides = array<i32>} : memref<72x512xf32, #tpu.memory_space<vmem>>, vector<8x512xf32>,
    %c511_i32 = arith.constant 511 : i32
    %64 = tpu.dynamic_rotate %38 by %c511_i32 dim 1 : vector<8x512xf32>, i32 -> vector<8x512xf32>
    %cst_26 = arith.constant 0.000000e+00 : f32
    %65 = vector.shape_cast %22 : vector<1x512xi1> to vector<1x512xi1>
    %66 = vector.broadcast %65 : vector<1x512xi1> to vector<8x512xi1>
    %67 = vector.broadcast %cst_26 : f32 to vector<8x512xf32>
    %68 = arith.select %66, %64, %67 : vector<8x512xi1>, vector<8x512xf32>
    %c40 = arith.constant 40 : index
    %c0_27 = arith.constant 0 : index
    %69 = vector.load %arg9[%c40, %c0_27] : memref<72x512xf32, #tpu.memory_space<vmem>>, vector<8x512xf32>
    tpu.vector_store %arg9[%c40, %c0_27], %68 {strides = array<i32>} : memref<72x512xf32, #tpu.memory_space<vmem>>, vector<8x512xf32>,
    %c497_i32 = arith.constant 497 : i32
    %70 = tpu.dynamic_rotate %38 by %c497_i32 dim 1 : vector<8x512xf32>, i32 -> vector<8x512xf32>
    %cst_28 = arith.constant 0.000000e+00 : f32
    %71 = vector.shape_cast %27 : vector<1x512xi1> to vector<1x512xi1>
    %72 = vector.broadcast %71 : vector<1x512xi1> to vector<8x512xi1>
    %73 = vector.broadcast %cst_28 : f32 to vector<8x512xf32>
    %74 = arith.select %72, %70, %73 : vector<8x512xi1>, vector<8x512xf32>
    %c48 = arith.constant 48 : index
    %c0_29 = arith.constant 0 : index
    %75 = vector.load %arg9[%c48, %c0_29] : memref<72x512xf32, #tpu.memory_space<vmem>>, vector<8x512xf32>
    tpu.vector_store %arg9[%c48, %c0_29], %74 {strides = array<i32>} : memref<72x512xf32, #tpu.memory_space<vmem>>, vector<8x512xf32>,
    %c496_i32 = arith.constant 496 : i32
    %76 = tpu.dynamic_rotate %38 by %c496_i32 dim 1 : vector<8x512xf32>, i32 -> vector<8x512xf32>
    %cst_30 = arith.constant 0.000000e+00 : f32
    %77 = vector.shape_cast %29 : vector<1x512xi1> to vector<1x512xi1>
    %78 = vector.broadcast %77 : vector<1x512xi1> to vector<8x512xi1>
    %79 = vector.broadcast %cst_30 : f32 to vector<8x512xf32>
    %80 = arith.select %78, %76, %79 : vector<8x512xi1>, vector<8x512xf32>
    %c56 = arith.constant 56 : index
    %c0_31 = arith.constant 0 : index
    %81 = vector.load %arg9[%c56, %c0_31] : memref<72x512xf32, #tpu.memory_space<vmem>>, vector<8x512xf32>
    tpu.vector_store %arg9[%c56, %c0_31], %80 {strides = array<i32>} : memref<72x512xf32, #tpu.memory_space<vmem>>, vector<8x512xf32>,
    %c495_i32 = arith.constant 495 : i32
    %82 = tpu.dynamic_rotate %38 by %c495_i32 dim 1 : vector<8x512xf32>, i32 -> vector<8x512xf32>
    %cst_32 = arith.constant 0.000000e+00 : f32
    %83 = vector.shape_cast %34 : vector<1x512xi1> to vector<1x512xi1>
    %84 = vector.broadcast %83 : vector<1x512xi1> to vector<8x512xi1>
    %85 = vector.broadcast %cst_32 : f32 to vector<8x512xf32>
    %86 = arith.select %84, %82, %85 : vector<8x512xi1>, vector<8x512xf32>
    %c64 = arith.constant 64 : index
    %c0_33 = arith.constant 0 : index
    %87 = vector.load %arg9[%c64, %c0_33] : memref<72x512xf32, #tpu.memory_space<vmem>>, vector<8x512xf32>
    tpu.vector_store %arg9[%c64, %c0_33], %86 {strides = array<i32>} : memref<72x512xf32, #tpu.memory_space<vmem>>, vector<8x512xf32>,
    %c0_34 = arith.constant 0 : index
    %c0_35 = arith.constant 0 : index
    %88 = vector.load %arg3[%c0_34, %c0_35] : memref<48x72xf32, #tpu.memory_space<vmem>>, vector<48x72xf32>
    %c0_36 = arith.constant 0 : index
    %c0_37 = arith.constant 0 : index
    %89 = vector.load %arg9[%c0_36, %c0_37] : memref<72x512xf32, #tpu.memory_space<vmem>>, vector<72x512xf32>
    %cst_38 = arith.constant dense<0.000000e+00> : vector<48x512xf32>
    %90 = tpu.matmul %88, %89, %cst_38 {dimension_numbers = #tpu.dot_dimension_numbers<[1], [0], [0], [1], [0, 0, 1, 1], [], []>} : vector<48x72xf32>, vector<72x512xf32>, vector<48x512xf32> -> vector<48x512xf32>
    %c0_39 = arith.constant 0 : index
    %c0_40 = arith.constant 0 : index
    %91 = vector.load %arg4[%c0_39, %c0_40] : memref<48x1xf32, #tpu.memory_space<vmem>>, vector<48x1xf32>
    %92 = vector.broadcast %91 : vector<48x1xf32> to vector<48x512xf32>
    %93 = arith.addf %90, %92 : vector<48x512xf32>
    %c0_41 = arith.constant 0 : index
    %94 = memref.load %arg5[%c0_41] : memref<1xf32, #tpu.memory_space<smem>>
    %cst_42 = arith.constant 0.000000e+00 : f32
    %95 = vector.broadcast %cst_42 : f32 to vector<48x512xf32>
    %96 = arith.cmpf oge, %93, %95 : vector<48x512xf32>
    %97 = vector.broadcast %94 : f32 to vector<48x512xf32>
    %98 = arith.mulf %93, %97 : vector<48x512xf32>
    %99 = arith.select %96, %93, %98 : vector<48x512xi1>, vector<48x512xf32>
    %c0_43 = arith.constant 0 : index
    %c0_44 = arith.constant 0 : index
    %100 = vector.load %arg6[%c0_43, %c0_44] : memref<72x48xf32, #tpu.memory_space<vmem>>, vector<72x48xf32>
    %cst_45 = arith.constant dense<0.000000e+00> : vector<72x512xf32>
    %101 = tpu.matmul %100, %99, %cst_45 {dimension_numbers = #tpu.dot_dimension_numbers<[1], [0], [0], [1], [0, 0, 1, 1], [], []>} : vector<72x48xf32>, vector<48x512xf32>, vector<72x512xf32> -> vector<72x512xf32>
    %102 = vector.extract_strided_slice %101 {offsets = [32, 0], sizes = [3, 512], strides = [1, 1]} : vector<72x512xf32> to vector<3x512xf32>
    %103 = vector.extract_strided_slice %101 {offsets = [0, 0], sizes = [3, 512], strides = [1, 1]} : vector<72x512xf32> to vector<3x512xf32>
    %c17_i32_46 = arith.constant 17 : i32
    %104 = tpu.dynamic_rotate %103 by %c17_i32_46 dim 1 : vector<3x512xf32>, i32 -> vector<3x512xf32>
    %cst_47 = arith.constant 0.000000e+00 : f32
    %105 = vector.shape_cast %11 : vector<1x512xi1> to vector<1x512xi1>
    %106 = vector.broadcast %105 : vector<1x512xi1> to vector<3x512xi1>
    %107 = vector.broadcast %cst_47 : f32 to vector<3x512xf32>
    %108 = arith.select %106, %104, %107 : vector<3x512xi1>, vector<3x512xf32>
    %109 = arith.addf %102, %108 : vector<3x512xf32>
    %110 = vector.extract_strided_slice %101 {offsets = [8, 0], sizes = [3, 512], strides = [1, 1]} : vector<72x512xf32> to vector<3x512xf32>
    %c16_i32_48 = arith.constant 16 : i32
    %111 = tpu.dynamic_rotate %110 by %c16_i32_48 dim 1 : vector<3x512xf32>, i32 -> vector<3x512xf32>
    %cst_49 = arith.constant 0.000000e+00 : f32
    %112 = vector.shape_cast %13 : vector<1x512xi1> to vector<1x512xi1>
    %113 = vector.broadcast %112 : vector<1x512xi1> to vector<3x512xi1>
    %114 = vector.broadcast %cst_49 : f32 to vector<3x512xf32>
    %115 = arith.select %113, %111, %114 : vector<3x512xi1>, vector<3x512xf32>
    %116 = arith.addf %109, %115 : vector<3x512xf32>
    %117 = vector.extract_strided_slice %101 {offsets = [16, 0], sizes = [3, 512], strides = [1, 1]} : vector<72x512xf32> to vector<3x512xf32>
    %c15_i32_50 = arith.constant 15 : i32
    %118 = tpu.dynamic_rotate %117 by %c15_i32_50 dim 1 : vector<3x512xf32>, i32 -> vector<3x512xf32>
    %cst_51 = arith.constant 0.000000e+00 : f32
    %119 = vector.shape_cast %18 : vector<1x512xi1> to vector<1x512xi1>
    %120 = vector.broadcast %119 : vector<1x512xi1> to vector<3x512xi1>
    %121 = vector.broadcast %cst_51 : f32 to vector<3x512xf32>
    %122 = arith.select %120, %118, %121 : vector<3x512xi1>, vector<3x512xf32>
    %123 = arith.addf %116, %122 : vector<3x512xf32>
    %124 = vector.extract_strided_slice %101 {offsets = [24, 0], sizes = [3, 512], strides = [1, 1]} : vector<72x512xf32> to vector<3x512xf32>
    %c1_i32_52 = arith.constant 1 : i32
    %125 = tpu.dynamic_rotate %124 by %c1_i32_52 dim 1 : vector<3x512xf32>, i32 -> vector<3x512xf32>
    %cst_53 = arith.constant 0.000000e+00 : f32
    %126 = vector.shape_cast %20 : vector<1x512xi1> to vector<1x512xi1>
    %127 = vector.broadcast %126 : vector<1x512xi1> to vector<3x512xi1>
    %128 = vector.broadcast %cst_53 : f32 to vector<3x512xf32>
    %129 = arith.select %127, %125, %128 : vector<3x512xi1>, vector<3x512xf32>
    %130 = arith.addf %123, %129 : vector<3x512xf32>
    %131 = vector.extract_strided_slice %101 {offsets = [40, 0], sizes = [3, 512], strides = [1, 1]} : vector<72x512xf32> to vector<3x512xf32>
    %c511_i32_54 = arith.constant 511 : i32
    %132 = tpu.dynamic_rotate %131 by %c511_i32_54 dim 1 : vector<3x512xf32>, i32 -> vector<3x512xf32>
    %cst_55 = arith.constant 0.000000e+00 : f32
    %133 = vector.shape_cast %22 : vector<1x512xi1> to vector<1x512xi1>
    %134 = vector.broadcast %133 : vector<1x512xi1> to vector<3x512xi1>
    %135 = vector.broadcast %cst_55 : f32 to vector<3x512xf32>
    %136 = arith.select %134, %132, %135 : vector<3x512xi1>, vector<3x512xf32>
    %137 = arith.addf %130, %136 : vector<3x512xf32>
    %138 = vector.extract_strided_slice %101 {offsets = [48, 0], sizes = [3, 512], strides = [1, 1]} : vector<72x512xf32> to vector<3x512xf32>
    %c497_i32_56 = arith.constant 497 : i32
    %139 = tpu.dynamic_rotate %138 by %c497_i32_56 dim 1 : vector<3x512xf32>, i32 -> vector<3x512xf32>
    %cst_57 = arith.constant 0.000000e+00 : f32
    %140 = vector.shape_cast %27 : vector<1x512xi1> to vector<1x512xi1>
    %141 = vector.broadcast %140 : vector<1x512xi1> to vector<3x512xi1>
    %142 = vector.broadcast %cst_57 : f32 to vector<3x512xf32>
    %143 = arith.select %141, %139, %142 : vector<3x512xi1>, vector<3x512xf32>
    %144 = arith.addf %137, %143 : vector<3x512xf32>
    %145 = vector.extract_strided_slice %101 {offsets = [56, 0], sizes = [3, 512], strides = [1, 1]} : vector<72x512xf32> to vector<3x512xf32>
    %c496_i32_58 = arith.constant 496 : i32
    %146 = tpu.dynamic_rotate %145 by %c496_i32_58 dim 1 : vector<3x512xf32>, i32 -> vector<3x512xf32>
    %cst_59 = arith.constant 0.000000e+00 : f32
    %147 = vector.shape_cast %29 : vector<1x512xi1> to vector<1x512xi1>
    %148 = vector.broadcast %147 : vector<1x512xi1> to vector<3x512xi1>
    %149 = vector.broadcast %cst_59 : f32 to vector<3x512xf32>
    %150 = arith.select %148, %146, %149 : vector<3x512xi1>, vector<3x512xf32>
    %151 = arith.addf %144, %150 : vector<3x512xf32>
    %152 = vector.extract_strided_slice %101 {offsets = [64, 0], sizes = [3, 512], strides = [1, 1]} : vector<72x512xf32> to vector<3x512xf32>
    %c495_i32_60 = arith.constant 495 : i32
    %153 = tpu.dynamic_rotate %152 by %c495_i32_60 dim 1 : vector<3x512xf32>, i32 -> vector<3x512xf32>
    %cst_61 = arith.constant 0.000000e+00 : f32
    %154 = vector.shape_cast %34 : vector<1x512xi1> to vector<1x512xi1>
    %155 = vector.broadcast %154 : vector<1x512xi1> to vector<3x512xi1>
    %156 = vector.broadcast %cst_61 : f32 to vector<3x512xf32>
    %157 = arith.select %155, %153, %156 : vector<3x512xi1>, vector<3x512xf32>
    %158 = arith.addf %151, %157 : vector<3x512xf32>
    %c0_62 = arith.constant 0 : index
    %c0_63 = arith.constant 0 : index
    %159 = vector.load %arg7[%c0_62, %c0_63] : memref<3x1xf32, #tpu.memory_space<vmem>>, vector<3x1xf32>
    %160 = vector.broadcast %159 : vector<3x1xf32> to vector<3x512xf32>
    %161 = arith.addf %158, %160 : vector<3x512xf32>
    %162 = arith.negf %161 : vector<3x512xf32>
    %163 = math.exp %162 : vector<3x512xf32>
    %cst_64 = arith.constant 1.000000e+00 : f32
    %164 = vector.broadcast %cst_64 : f32 to vector<3x512xf32>
    %165 = arith.addf %164, %163 : vector<3x512xf32>
    %166 = arith.divf %164, %165 : vector<3x512xf32>
    %c0_65 = arith.constant 0 : index
    %c0_66 = arith.constant 0 : index
    %167 = vector.load %arg8[%c0_65, %c0_66] : memref<3x512xf32, #tpu.memory_space<vmem>>, vector<3x512xf32>
    tpu.vector_store %arg8[%c0_65, %c0_66], %166 {strides = array<i32>} : memref<3x512xf32, #tpu.memory_space<vmem>>, vector<3x512xf32>,
    return
  }
  func.func @transform_0(%arg0: i32) -> (i32, i32) {
    %c0_i32 = arith.constant 0 : i32
    %c0_i32_0 = arith.constant 0 : i32
    return %c0_i32, %arg0 : i32, i32
  }
  func.func @transform_1(%arg0: i32) -> (i32, i32) {
    %c0_i32 = arith.constant 0 : i32
    %c0_i32_0 = arith.constant 0 : i32
    return %c0_i32, %arg0 : i32, i32
  }
  func.func @transform_2(%arg0: i32) -> (i32, i32) {
    %c0_i32 = arith.constant 0 : i32
    %c0_i32_0 = arith.constant 0 : i32
    %c0_i32_1 = arith.constant 0 : i32
    return %c0_i32, %c0_i32_0 : i32, i32
  }
  func.func @transform_3(%arg0: i32) -> (i32, i32) {
    %c0_i32 = arith.constant 0 : i32
    %c0_i32_0 = arith.constant 0 : i32
    %c0_i32_1 = arith.constant 0 : i32
    return %c0_i32, %c0_i32_0 : i32, i32
  }
  func.func @transform_4(%arg0: i32) -> i32 {
    %c0_i32 = arith.constant 0 : i32
    %c0_i32_0 = arith.constant 0 : i32
    return %c0_i32 : i32
  }
  func.func @transform_5(%arg0: i32) -> (i32, i32) {
    %c0_i32 = arith.constant 0 : i32
    %c0_i32_0 = arith.constant 0 : i32
    %c0_i32_1 = arith.constant 0 : i32
    return %c0_i32, %c0_i32_0 : i32, i32
  }
  func.func @transform_6(%arg0: i32) -> (i32, i32) {
    %c0_i32 = arith.constant 0 : i32
    %c0_i32_0 = arith.constant 0 : i32
    %c0_i32_1 = arith.constant 0 : i32
    return %c0_i32, %c0_i32_0 : i32, i32
  }
  func.func @transform_7(%arg0: i32) -> (i32, i32) {
    %c0_i32 = arith.constant 0 : i32
    %c0_i32_0 = arith.constant 0 : i32
    return %c0_i32, %arg0 : i32, i32
  }
}

</mosaic_0001>

<bundles_post_ra>
// kernel: tpu_custom_call.1
= control target key start
LH: loop header
LB: loop body
LE: loop exit
PB: predicated region body
PF: predicated region fallthrough
CT: control target
= control target key end

     0   :  { %s2858_s0 = inlined_call_operand.vmem [shape: f32[3,1024], index: 0, kind: input, shape index: {}]   ;;  %s2859_s1 = inlined_call_operand.vmem [shape: f32[3,1024], index: 1, kind: input, shape index: {}]   ;;  %s2860_s2 = inlined_call_operand.vmem [shape: f32[48,72], index: 2, kind: input, shape index: {}]   ;;  %s2861_s3 = inlined_call_operand.vmem [shape: f32[48,1], index: 3, kind: input, shape index: {}]   ;;  %s2862_s4 = inlined_call_operand.<no memory space> [shape: f32[1], index: 4, kind: input, shape index: {}]   ;;  %s2863_s5 = inlined_call_operand.vmem [shape: f32[72,48], index: 5, kind: input, shape index: {}]   ;;  %s2864_s6 = inlined_call_operand.vmem [shape: f32[3,1], index: 6, kind: input, shape index: {}]   ;;  %s2865_s7 = inlined_call_operand.hbm [shape: f32[3,1024], index: 7, kind: output, shape index: {}]  }
   0x1   :  { %12 = sst [smem:[#allocation3]] %s2862_s4 }
   0x2   :  { %13 = vsyncpa [#allocation5], 0 }
   0x3   :  { %15 = vsyncpa [#allocation5 + $0x1], 0  ;;  %s1974_s26 = smov 0   ;;  %s1976_s27 = smov 0  }
   0x4   :  { %s1978_s28 = smov 0   ;;  %s1980_s29 = smov 0  }
   0x5 LB: > { %s1995_s4 = sadd.s32 4294967295, %s1918_s29   ;;  %s1558_s30 = sadd.s32 4294967294, %s1918_s29   ;;  %s1918_s29 = sphi %s1980_s29, %s3083_s29   ;;  %s1914_s28 = sphi %s1978_s28, %s3082_s28   ;;  %s1910_s27 = sphi %s1976_s27, %s3081_s27   ;;  %s1906_s26 = sphi %s1974_s26, %s3080_s26  }
   0x6   : > { %s1999_s8 = sadd.s32 1, %s1918_s29   ;;  %s185_s9 = sadd.s32 1, %s1914_s28 }
   0x7   : > { %s182_s10 = ssub.s32 %s1918_s29, %s1999_s8  ;;  %p195_p0 = scmp.ne.s32.totalorder %s1914_s28, %s1910_s27 }
   0x8   : > { %p183_p1 = scmp.eq.s32.totalorder %s182_s10, 0  ;;  %p196_p2 = scmp.eq.s32.totalorder %s1995_s4, 1 }
   0x9   : > { %p201_p3 = scmp.ne.s32.totalorder %s1910_s27, %s1906_s26  ;;  %p202_p4 = scmp.eq.s32.totalorder %s1558_s30, 1 }
   0xa   : > { %s2010_s11 = scalar_select %p183_p1, %s1914_s28, %s185_s9  }
   0xb   : > { %p2012_p5 = por %p196_p2, %p195_p0  ;;  %p2016_p6 = por %p202_p4, %p201_p3 }
   0xc   : > { %p1561_p7 = scmp.ge.s32.totalorder %s1918_s29, 1  ;;  %p253_p8 = scmp.lt.s32.totalorder %s1918_s29, 3 }
   0xe   : > { %p254_p9 = pnand %p1561_p7, %p253_p8 }
  0x10   : > { %257 = sbr.rel (%p254_p9) target bundleno = 882 (0x372), region = 48 }
  0x17   : > { %s1563_s14 = sshll.u32 %s1995_s4, 2  ;;  %vm374_vm0 = vcmask 1042432   ;;  %vm2872_vm1 = vcmask 1045504   ;;  %s1920_s22 = smov 16   ;;  %v2904_v22 = vmov 0.0   ;;  %v663_v23 = vld [vmem:[%s2861_s3 + $0x8] sm:$0xff]  ;;  %v303_v31 = vlaneseq }
  0x18   : > { %p291_p10 = scmp.lt.s32.totalorder %s1563_s14, 7  ;;  %s1921_s23 = smov 17   ;;  %781 = vmatprep.mubr.f32.mxu0 %v2904_v22  ;;  %882 = vmatprep.mubr.f32.mxu1 %v2904_v22  ;;  %v662_v24 = vld [vmem:[%s2861_s3] sm:$0xff]  ;;  %v1929_v25 = vmov 0   ;;  %v664_v26 = vld [vmem:[%s2861_s3 + $0x10] sm:$0xff]  ;;  %v665_v27 = vld [vmem:[%s2861_s3 + $0x18] sm:$0xff] }
  0x19   : > { %s1922_s24 = smov 15   ;;  %s1923_s25 = smov 1   ;;  %1835 = vset.pattern.permute.xlu1 %v1929_v25  ;;  %1834 = vset.pattern.permute.xlu0 %v1929_v25  ;;  %v666_v28 = vld [vmem:[%s2861_s3 + $0x20] sm:$0xff]  ;;  %v667_v29 = vld [vmem:[%s2861_s3 + $0x28] sm:$0xff]  ;;  %v2090_v32 = vand.u32 127, %v303_v31  ;;  %v2911_v46 = vmov 0 }
  0x1a   : > { %s3085_s14 = smov (!%p291_p10, %s1563_s14), 7  ;;  %s1924_s30 = smov 127   ;;  %v1428_v30 = vld [vmem:[%s2864_s6] sm:$0x7]  ;;  %v2915_v48 = vmov 0  ;;  %v2917_v53 = vmov 0 }
  0x1b   : > { %s1564_s15 = sshll.u32 %s3085_s14, 2  ;;  %s2870_s9 = smov 113   ;;  %v305_v33 = vadd.s32 128, %v2090_v32  ;;  %v307_v34 = vadd.s32 384, %v2090_v32  ;;  %v312_v36 = vshra.s32 %v2090_v32, 4  ;;  %v306_v38 = vadd.s32 256, %v2090_v32 }
  0x1c   : > { %s294_s18 = scalar_lea.vmem %s2858_s0, %s1564_s15  ;;  %s300_s21 = scalar_lea.vmem %s2859_s1, %s1564_s15  ;;  %v308_v41 = vand.u32 15, %v2090_v32  ;;  %vm2881_vm9 = vcmp.lt.s32.totalorder %v2090_v32, 17  ;;  %vm2875_vm10 = vcmp.lt.s32.totalorder %v2090_v32, 16  ;;  %v2919_v58 = vmov 0 }
  0x1d   : > { %v352_v0 = vld [vmem:[%s294_s18] sm:$0x77]  ;;  %v353_v1 = vld [vmem:[%s294_s18 + $0x8] sm:$0x77]  ;;  %s2866_s10 = smov 112   ;;  %s2868_s14 = smov 111  }
  0x1e   : > { %v354_v2 = vld [vmem:[%s300_s21] sm:$0x77]  ;;  %v355_v3 = vld [vmem:[%s300_s21 + $0x8] sm:$0x77]  ;;  %v358_v4 = vcombine.high %v352_v0, %v352_v0  ;;  %v359_v7 = vcombine.high %v353_v1, %v353_v1  ;;  %v313_v35 = vshra.s32 %v305_v33, 4  ;;  %v315_v37 = vshra.s32 %v307_v34, 4 }
  0x1f   : > { %v364_v5 = vcombine.high %v354_v2, %v354_v2  ;;  %v366_v6 = vrot.slane %v354_v2, 5  ;;  %v365_v8 = vcombine.high %v355_v3, %v355_v3  ;;  %v368_v9 = vrot.slane %v355_v3, 5  ;;  %s1930_s17 = smov [#allocation4]  }
  0x20   : > { %v309_v39 = vand.u32 15, %v305_v33  ;;  %v2096_v40 = vand.u32 15, %v313_v35  ;;  %v2099_v42 = vand.u32 15, %v312_v36  ;;  %v311_v43 = vand.u32 15, %v307_v34  ;;  %s1860_s18 = sshll.u32 %s1930_s17, 4  ;;  %s1861_s18 = int_to_ptr.vmem [resolvable:$false] %s1860_s18 }
  0x21   : > { %v367_v10 = vrot.slane %v364_v5, 5  ;;  %v2030_v11 = vsel %vm374_vm0, %v352_v0, %v366_v6  ;;  %v369_v13 = vrot.slane %v365_v8, 5  ;;  %v2035_v14 = vsel %vm374_vm0, %v353_v1, %v368_v9 }
  0x22   : > { %v380_v12 = vsel %vm2872_vm1, %v2030_v11, 0.0  ;;  %v382_v18 = vsel %vm2872_vm1, %v2035_v14, 0.0  ;;  %v2101_v44 = vand.u32 15, %v315_v37  ;;  %v314_v45 = vshra.s32 %v306_v38, 4 }
  0x23   : > { %v2038_v15 = vsel %vm374_vm0, %v358_v4, %v367_v10  ;;  %v2043_v17 = vsel %vm374_vm0, %v359_v7, %v369_v13  ;;  %vm2873_vm2 = vcmp.ge.s32.totalorder %v2096_v40, 1  ;;  %vm2104_vm3 = vcmp.ge.s32.totalorder %v309_v39, 1 }
  0x24   : > { %v381_v16 = vsel %vm2872_vm1, %v2038_v15, 0.0  ;;  %v383_v20 = vsel %vm2872_vm1, %v2043_v17, 0.0  ;;  %v2912_v46 = vsel %vm2104_vm3, 4294967295, %v2911_v46  ;;  %vm2874_vm4 = vcmp.ge.s32.totalorder %v2099_v42, 1  ;;  %vm2124_vm8 = vmand %vm2873_vm2, %vm2104_vm3 }
  0x25   : > { %v1774_v19 = vpack.i.bf16 %v381_v16, %v380_v12  ;;  %v1779_v21 = vpack.i.bf16 %v383_v20, %v382_v18  ;;  %vm2109_vm5 = vcmp.ge.s32.totalorder %v308_v41, 1  ;;  %vm2876_vm6 = vcmp.ge.s32.totalorder %v2101_v44, 1  ;;  %vm1644_vm13 = vmpackc.low %vm2873_vm2, %vm2124_vm8 }
  0x26   : > { %vm2114_vm7 = vcmp.ge.s32.totalorder %v311_v43, 1  ;;  %v310_v49 = vand.u32 15, %v306_v38  ;;  %v2118_v50 = vand.u32 15, %v314_v45  ;;  %v2918_v53 = vsel %vm2124_vm8, 4294967295, %v2917_v53  ;;  %vm2134_vm11 = vmand %vm2874_vm4, %vm2109_vm5 }
  0x27   : > { %1775 = vrot.lane.b32.xlu1 %v1774_v19, %s1920_s22  ;;  %1765 = vrot.lane.b32.xlu0 %v1774_v19, %s1921_s23  ;;  %v2916_v48 = vsel %vm2114_vm7, 4294967295, %v2915_v48  ;;  %v2920_v58 = vsel %vm2134_vm11, 4294967295, %v2919_v58  ;;  %vm2142_vm12 = vmand %vm2876_vm6, %vm2114_vm7  ;;  %v2921_v59 = vmov 0  ;;  %v2923_v62 = vmov 0 }
  0x28   : > { %v2922_v59 = vsel %vm2142_vm12, 4294967295, %v2921_v59  ;;  %vm2877_vm14 = vcmp.ge.s32.totalorder %v2118_v50, 1  ;;  %vm2155_vm15 = vcmp.ge.s32.totalorder %v310_v49, 1  ;;  %vm2163_vm0 = vmpackc.low %vm2874_vm4, %vm2134_vm11  ;;  %vm2167_vm1 = vcmp.le.s32.totalorder %v309_v39, 14 }
  0x29   : > { %v2924_v62 = vsel %vm2155_vm15, 4294967295, %v2923_v62  ;;  %v2927_v3 = vmov 0  ;;  %vm2175_vm2 = vmpackc.low %vm2876_vm6, %vm2142_vm12  ;;  %v2931_v9 = vmov 0  ;;  %v2933_v10 = vmov 0 }
  0x2a   : > { %v2928_v3 = vsel %vm2167_vm1, 4294967295, %v2927_v3  ;;  %vm2183_vm4 = vmand %vm2877_vm14, %vm2155_vm15  ;;  %vm2935_vm6 = vcmp.lt.s32.totalorder %v2090_v32, 16  ;;  %vm2937_vm14 = vcmp.ge.s32.totalorder %v2096_v40, 1  ;;  %vm2219_vm8 = vcmp.le.s32.totalorder %v310_v49, 14 }
  0x2b   : > { %1780 = vrot.lane.b32.xlu1 %v1779_v21, %s1920_s22  ;;  %1770 = vrot.lane.b32.xlu0 %v1779_v21, %s1921_s23  ;;  %v2932_v9 = vsel %vm2183_vm4, 4294967295, %v2931_v9  ;;  %vm2203_vm12 = vmand %vm2937_vm14, %vm2167_vm1  ;;  %vm2215_vm14 = vcmp.le.s32.totalorder %v308_v41, 14  ;;  %v2946_v35 = vmov 0  ;;  %v2949_v38 = vmov 0 }
  0x2f   : > { %1790 = vrot.lane.b32.xlu1 %v1779_v21, %s1922_s24  ;;  %1785 = vrot.lane.b32.xlu0 %v1774_v19, %s1922_s24 }
  0x33   : > { %1800 = vrot.lane.b32.xlu1 %v1779_v21, %s1923_s25  ;;  %1795 = vrot.lane.b32.xlu0 %v1774_v19, %s1923_s25 }
  0x37   : > { %1810 = vrot.lane.b32.xlu1 %v1779_v21, %s1924_s30  ;;  %1805 = vrot.lane.b32.xlu0 %v1774_v19, %s1924_s30 }
  0x3b   : > { %1820 = vrot.lane.b32.xlu1 %v1779_v21, %s2870_s9  ;;  %1815 = vrot.lane.b32.xlu0 %v1774_v19, %s2870_s9  ;;  %s1862_s9 = scalar_lea.vmem %s1861_s18, 512 }
  0x3f   : > { %1830 = vrot.lane.b32.xlu1 %v1779_v21, %s2866_s10  ;;  %1825 = vrot.lane.b32.xlu0 %v1774_v19, %s2866_s10  ;;  %v2938_v19 = vmov 0  ;;  %s1606_s10 = sshll.u32 %s1995_s4, 8 }
  0x40   : > { %v2939_v19 = vsel %vm2203_vm12, 4294967295, %v2938_v19  ;;  %s2816_s15 = scalar_lea.hbm %s2865_s7, %s1606_s10 }
  0x43   : > { %593 = vrot.lane.b32.xlu1 %v381_v16, %s2868_s14  ;;  %591 = vrot.lane.b32.xlu0 %v380_v12, %s2868_s14 }
  0x47   : > { %597 = vrot.lane.b32.xlu1 %v383_v20, %s2868_s14  ;;  %595 = vrot.lane.b32.xlu0 %v382_v18, %s2868_s14  ;;  %s919_s14 = sld [smem:[#allocation3]] }
  0x4b   : > { %675 = vperm.xlu1 %1835, %v663_v23   ;;  %670 = vperm.xlu0 %1834, %v662_v24  }
  0x4f   : > { %680 = vperm.xlu1 %1835, %v664_v26   ;;  %685 = vperm.xlu0 %1834, %v665_v27  }
  0x53   : > { %690 = vperm.xlu1 %1835, %v666_v28   ;;  %695 = vperm.xlu0 %1834, %v667_v29   ;;  %v2941_v28 = vmov 0  ;;  %v2943_v29 = vmov 0 }
  0x54   : > { %v2942_v28 = vsel %vm2215_vm14, 4294967295, %v2941_v28  ;;  %v2944_v29 = vsel %vm2219_vm8, 4294967295, %v2943_v29 }
  0x57   : > { %1431 = vperm.xlu1 %1835, %v1428_v30  }
  0x99   : > { %v1776_v51 = vpop.permute.xlu1 %1775  ;;  %v1766_v52 = vpop.permute.xlu0 %1765 }
  0x9a   : > { %v1778_v54 = vunpack.i.h.bf16 %v1776_v51  ;;  %v1777_v55 = vunpack.i.l.bf16 %v1776_v51  ;;  %v1768_v56 = vunpack.i.h.bf16 %v1766_v52  ;;  %v1767_v57 = vunpack.i.l.bf16 %v1766_v52 }
  0x9c   : > { %v395_v60 = vsel %vm2881_vm9, %v1767_v57, %v1768_v56  ;;  %v424_v61 = vsel %vm2875_vm10, %v1777_v55, %v1778_v54  ;;  %vm2187_vm10 = vcmp.le.s32.totalorder %v311_v43, 14 }
  0x9d   : > { %v1781_v63 = vpop.permute.xlu1 %1780  ;;  %v1771_v0 = vpop.permute.xlu0 %1770  ;;  %v1643_v1 = vpack.c.bf16 %v424_v61, %v395_v60  ;;  %v2934_v10 = vsel %vm2187_vm10, 4294967295, %v2933_v10 }
  0x9e   : > { %v1783_v4 = vunpack.i.h.bf16 %v1781_v63  ;;  %v1782_v5 = vunpack.i.l.bf16 %v1781_v63  ;;  %v1773_v6 = vunpack.i.h.bf16 %v1771_v0  ;;  %v1772_v7 = vunpack.i.l.bf16 %v1771_v0 }
  0x9f   : > { %1645 = vmatprep.subr.msk.bf16.mxu0 %vm1644_vm13, %v1643_v1  ;;  %vm2936_vm13 = vmmov %vm2935_vm6 }
  0xa0   : > { %v396_v12 = vsel %vm2881_vm9, %v1773_v6, %v1767_v57  ;;  %v425_v13 = vsel %vm2935_vm6, %v1783_v4, %v1777_v55  ;;  %v393_v16 = vsel %vm2881_vm9, %v1772_v7, %v1773_v6  ;;  %v422_v18 = vsel %vm2936_vm13, %v1782_v5, %v1783_v4 }
  0xa1   : > { %v1791_v20 = vpop.permute.xlu1 %1790  ;;  %v1786_v21 = vpop.permute.xlu0 %1785  ;;  %v1646_v23 = vpack.c.bf16 %v425_v13, %v396_v12  ;;  %v1667_v24 = vpack.c.bf16 %v422_v18, %v393_v16  ;;  %v394_v25 = vsel %vm2881_vm9, %v1768_v56, %v1772_v7  ;;  %v423_v26 = vsel %vm2935_vm6, %v1778_v54, %v1782_v5 }
  0xa2   : > { %v1793_v27 = vunpack.i.h.bf16 %v1791_v20  ;;  %vm2940_vm13 = vcmp.ge.s32.totalorder %v2118_v50, 1  ;;  %v1792_v30 = vunpack.i.l.bf16 %v1791_v20  ;;  %v1788_v31 = vunpack.i.h.bf16 %v1786_v21 }
  0xa3   : > { %vm1671_vm11 = vmpackc.low %vm2940_vm13, %vm2183_vm4  ;;  %v1787_v33 = vunpack.i.l.bf16 %v1786_v21  ;;  %1648 = vmatpush1.bf16.msk.msra.mxu0 %vm2163_vm0, %v1646_v23  ;;  %1669 = vmatprep.subr.msk.bf16.mxu1 %vm2175_vm2, %v1667_v24  ;;  %v1670_v34 = vpack.c.bf16 %v423_v26, %v394_v25  ;;  %vm2945_vm9 = vcmp.ge.s32.totalorder %v2101_v44, 1  ;;  %vm2948_vm6 = vcmp.ge.s32.totalorder %v2099_v42, 1 }
  0xa4   : > { %vm2236_vm4 = vmand %vm2945_vm9, %vm2187_vm10  ;;  %vm2954_vm2 = vcmp.lt.s32.totalorder %v2090_v32, 15  ;;  %v2976_v24 = vmov 0 }
  0xa5   : > { %v2947_v35 = vsel %vm2236_vm4, 4294967295, %v2946_v35  ;;  %1672 = vmatpush1.bf16.msk.msra.mxu1 %vm1671_vm11, %v1670_v34  ;;  %v1801_v36 = vpop.permute.xlu1 %1800  ;;  %v1796_v37 = vpop.permute.xlu0 %1795  ;;  %vm2246_vm13 = vmand %vm2948_vm6, %vm2215_vm14  ;;  %vm2951_vm11 = vcmp.ge.s32.totalorder %v2118_v50, 1  ;;  %v451_v51 = vsel %vm2954_vm2, %v1792_v30, %v1793_v27 }
  0xa6   : > { %v2950_v38 = vsel %vm2246_vm13, 4294967295, %v2949_v38  ;;  %v1803_v39 = vunpack.i.h.bf16 %v1801_v36  ;;  %v1802_v41 = vunpack.i.l.bf16 %v1801_v36  ;;  %v1798_v43 = vunpack.i.h.bf16 %v1796_v37  ;;  %vm2255_vm0 = vmand %vm2951_vm11, %vm2219_vm8 }
  0xa7   : > { %v1797_v45 = vunpack.i.l.bf16 %v1796_v37  ;;  %vm2955_vm6 = vmmov %vm2954_vm2  ;;  %vm2958_vm8 = vcmp.lt.s32.totalorder %v2090_v32, 1  ;;  %v2987_v36 = vmov 0 }
  0xa8   : > { %v452_v52 = vsel %vm2955_vm6, %v1788_v31, %v1792_v30  ;;  %vm2956_vm9 = vmmov %vm2954_vm2  ;;  %v480_v56 = vsel %vm2958_vm8, %v1802_v41, %v1803_v39 }
  0xa9   : > { %v453_v54 = vsel %vm2956_vm9, %v1787_v33, %v1788_v31  ;;  %vm2957_vm14 = vmmov %vm2954_vm2  ;;  %v1673_v63 = vpack.c.bf16 %v480_v56, %v451_v51  ;;  %v1811_v4 = vpop.permute.xlu1 %1810  ;;  %v1806_v5 = vpop.permute.xlu0 %1805 }
  0xaa   : > { %v454_v55 = vsel %vm2957_vm14, %v1793_v27, %v1787_v33  ;;  %vm1674_vm11 = vmpackc.low %vm2114_vm7, %vm2236_vm4  ;;  %v1813_v6 = vunpack.i.h.bf16 %v1811_v4  ;;  %v1812_v7 = vunpack.i.l.bf16 %v1811_v4  ;;  %v1808_v8 = vunpack.i.h.bf16 %v1806_v5 }
  0xab   : > { %vm2959_vm10 = vmmov %vm2958_vm8  ;;  %v1807_v12 = vunpack.i.l.bf16 %v1806_v5  ;;  %1675 = vmatprep.subr.msk.bf16.mxu1 %vm1674_vm11, %v1673_v63 }
  0xac   : > { %v481_v57 = vsel %vm2959_vm10, %v1798_v43, %v1802_v41  ;;  %vm2960_vm2 = vmmov %vm2958_vm8  ;;  %vm2962_vm10 = vcmask 1045504   ;;  %vm2967_vm8 = vnez %v2934_v10  ;;  %v2990_v41 = vmov 0 }
  0xad   : > { %v482_v60 = vsel %vm2960_vm2, %v1797_v45, %v1798_v43  ;;  %vm2961_vm6 = vmmov %vm2960_vm2  ;;  %v1676_v2 = vpack.c.bf16 %v481_v57, %v452_v52  ;;  %v1821_v31 = vpop.permute.xlu1 %1820  ;;  %v1816_v33 = vpop.permute.xlu0 %1815 }
  0xae   : > { %v483_v61 = vsel %vm2961_vm6, %v1803_v39, %v1797_v45  ;;  %v1649_v0 = vpack.c.bf16 %v482_v60, %v453_v54  ;;  %vm2290_vm9 = vmpackc.low %vm2167_vm1, %vm2962_vm10  ;;  %vm2970_vm1 = vcmp.lt.s32.totalorder %v2090_v32, 127  ;;  %v2993_v54 = vmov 0 }
  0xaf   : > { %v1652_v1 = vpack.c.bf16 %v483_v61, %v454_v55  ;;  %vm2965_vm2 = vmpackc.low %vm2104_vm3, %vm2203_vm12  ;;  %v513_v18 = vsel %vm2970_vm1, %v1812_v7, %v1813_v6 }
  0xb0   : > { %1651 = vmatprep.subr.msk.bf16.mxu0 %vm2965_vm2, %v1649_v0  ;;  %vm2966_vm6 = vmmov %vm2962_vm10  ;;  %vm2975_vm10 = vcmp.le.s32.totalorder %v2096_v40, 14  ;;  %v1682_v25 = vpack.c.bf16 %v513_v18, %v2035_v14  ;;  %v1822_v14 = vunpack.i.l.bf16 %v1821_v31 }
  0xb1   : > { %vm2307_vm14 = vmpackc.low %vm2967_vm8, %vm2966_vm6  ;;  %vm2986_vm8 = vcmp.le.s32.totalorder %v2101_v44, 14  ;;  %v1831_v37 = vpop.permute.xlu1 %1830  ;;  %v1826_v39 = vpop.permute.xlu0 %1825 }
  0xb2   : > { %vm2971_vm2 = vmmov %vm2970_vm1  ;;  %v1833_v43 = vunpack.i.h.bf16 %v1831_v37  ;;  %v1832_v45 = vunpack.i.l.bf16 %v1831_v37  ;;  %v1828_v51 = vunpack.i.h.bf16 %v1826_v39  ;;  %v1827_v52 = vunpack.i.l.bf16 %v1826_v39 }
  0xb3   : > { %v514_v20 = vsel %vm2971_vm2, %v1808_v8, %v1812_v7  ;;  %vm2972_vm12 = vmmov %vm2970_vm1  ;;  %vm2980_vm2 = vnez %v2942_v28  ;;  %v2509_v39 = vstv %s919_s14 }
  0xb4   : > { %v515_v21 = vsel %vm2972_vm12, %v1807_v12, %v1808_v8  ;;  %vm2973_vm11 = vmmov %vm2970_vm1  ;;  %v1655_v26 = vpack.c.bf16 %v514_v20, %v2038_v15  ;;  %v1818_v15 = vunpack.i.h.bf16 %v1816_v33 }
  0xb5   : > { %v516_v23 = vsel %vm2973_vm11, %v1813_v6, %v1807_v12  ;;  %vm2974_vm6 = vmpackc.low %vm2109_vm5, %vm2246_vm13  ;;  %v1658_v27 = vpack.c.bf16 %v515_v21, %v2030_v11  ;;  %v1823_v11 = vunpack.i.h.bf16 %v1821_v31  ;;  %v594_v7 = vpop.permute.xlu1 %593  ;;  %v592_v8 = vpop.permute.xlu0 %591  ;;  %v3000_v12 = vmov 0  ;;  %v621_v31 = vld [vmem:[%s2860_s2 + $0x8] sm:$0xff] }
  0xb6   : > { %1654 = vmatpush1.bf16.msk.msra.mxu0 %vm2974_vm6, %v1652_v1  ;;  %vm2329_vm1 = vmand %vm2975_vm10, %vm2104_vm3  ;;  %v1679_v30 = vpack.c.bf16 %v516_v23, %v2043_v17  ;;  %vm2979_vm10 = vcmask 1045504   ;;  %vm2982_vm3 = vnez %v2944_v29  ;;  %v1817_v17 = vunpack.i.l.bf16 %v1816_v33  ;;  %v622_v33 = vld [vmem:[%s2860_s2 + $0x10] sm:$0xff] }
  0xb7   : > { %v2977_v24 = vsel %vm2329_vm1, 4294967295, %v2976_v24  ;;  %vm2978_vm12 = vmpackc.low %vm2155_vm15, %vm2255_vm0  ;;  %1657 = vmatprep.subr.msk.bf16.mxu0 %vm2290_vm9, %v1655_v26  ;;  %vm2989_vm9 = vcmp.le.s32.totalorder %v2099_v42, 14  ;;  %v3011_v21 = vmov 0 }
  0xb8   : > { %1678 = vmatpush1.bf16.msk.msra.mxu1 %vm2978_vm12, %v1676_v2  ;;  %vm1659_vm11 = vmpackc.low %vm2980_vm2, %vm2979_vm10  ;;  %vm2983_vm12 = vcmp.le.s32.totalorder %v2096_v40, 14 }
  0xb9   : > { %vm2981_vm6 = vmmov %vm2979_vm10  ;;  %1681 = vmatprep.subr.msk.bf16.mxu1 %vm2307_vm14, %v1679_v30  ;;  %vm2898_vm14 = vcmp.lt.s32.totalorder %v2090_v32, 112  ;;  %v598_v18 = vpop.permute.xlu1 %597  ;;  %v596_v20 = vpop.permute.xlu0 %595 }
  0xba   : > { %vm1683_vm4 = vmpackc.low %vm2982_vm3, %vm2981_vm6  ;;  %vm2895_vm6 = vcmp.lt.s32.totalorder %v2090_v32, 113  ;;  %1660 = vmatpush1.bf16.msk.msra.mxu0 %vm1659_vm11, %v1658_v27  ;;  %vm2995_vm11 = vcmp.le.s32.totalorder %v2101_v44, 14  ;;  %v571_v61 = vsel %vm2898_vm14, %v1832_v45, %v1833_v43  ;;  %v572_v63 = vsel %vm2898_vm14, %v1828_v51, %v1832_v45  ;;  %v620_v27 = vld [vmem:[%s2860_s2] sm:$0xff] }
  0xbb   : > { %vm2358_vm10 = vmpackc.low %vm2983_vm12, %vm2329_vm1  ;;  %v542_v55 = vsel %vm2895_vm6, %v1822_v14, %v1823_v11  ;;  %v543_v56 = vsel %vm2895_vm6, %v1818_v15, %v1822_v14  ;;  %v544_v57 = vsel %vm2895_vm6, %v1817_v17, %v1818_v15  ;;  %v545_v60 = vsel %vm2895_vm6, %v1823_v11, %v1817_v17  ;;  %v623_v11 = vld [vmem:[%s2860_s2 + $0x18] sm:$0xff]  ;;  %v624_v14 = vld [vmem:[%s2860_s2 + $0x20] sm:$0xff] }
  0xbc   : > { %vm2367_vm13 = vmand %vm2986_vm8, %vm2114_vm7  ;;  %1684 = vmatpush1.bf16.msk.msra.mxu1 %vm1683_vm4, %v1682_v25  ;;  %vm2992_vm4 = vcmp.le.s32.totalorder %v2118_v50, 14  ;;  %v573_v0 = vsel %vm2898_vm14, %v1827_v52, %v1828_v51  ;;  %v574_v1 = vsel %vm2898_vm14, %v1833_v43, %v1827_v52  ;;  %v1688_v2 = vpack.c.bf16 %v571_v61, %v542_v55  ;;  %v625_v15 = vld [vmem:[%s2860_s2 + $0x28] sm:$0xff] }
  0xbd   : > { %v2988_v36 = vsel %vm2367_vm13, 4294967295, %v2987_v36  ;;  %vm2376_vm12 = vmand %vm2989_vm9, %vm2109_vm5  ;;  %v1661_v4 = vpack.c.bf16 %v572_v63, %v543_v56  ;;  %v1664_v5 = vpack.c.bf16 %v573_v0, %v544_v57  ;;  %v1685_v6 = vpack.c.bf16 %v574_v1, %v545_v60 }
  0xbe   : > { %v2991_v41 = vsel %vm2376_vm12, 4294967295, %v2990_v41  ;;  %vm2384_vm8 = vmand %vm2992_vm4, %vm2155_vm15  ;;  %vm2996_vm4 = vcmp.le.s32.totalorder %v2099_v42, 14  ;;  %vm2998_vm1 = vnez %v2928_v3  ;;  %vm2999_vm14 = vcmp.le.s32.totalorder %v2096_v40, 14 }
  0xbf   : > { %v2994_v54 = vsel %vm2384_vm8, 4294967295, %v2993_v54  ;;  %vm1686_vm9 = vmpackc.low %vm2995_vm11, %vm2367_vm13  ;;  %vm2997_vm11 = vcmp.le.s32.totalorder %v2118_v50, 14  ;;  %1663 = vmatprep.subr.msk.bf16.mxu0 %vm2358_vm10, %v1661_v4  ;;  %vm3010_vm10 = vcmp.le.s32.totalorder %v2118_v50, 14 }
  0xc0   : > { %vm1665_vm6 = vmpackc.low %vm2996_vm4, %vm2376_vm12  ;;  %1687 = vmatprep.subr.msk.bf16.mxu1 %vm1686_vm9, %v1685_v6  ;;  %vm3003_vm4 = vnez %v2934_v10  ;;  %vm3004_vm12 = vcmp.le.s32.totalorder %v2101_v44, 14 }
  0xc1   : > { %vm1689_vm13 = vmpackc.low %vm2997_vm11, %vm2384_vm8  ;;  %vm2903_vm11 = vcmp.lt.s32.totalorder %v2090_v32, 111  ;;  %1666 = vmatpush1.bf16.msk.msra.mxu0 %vm1665_vm6, %v1664_v5 }
  0xc2   : > { %vm2420_vm7 = vmand %vm2999_vm14, %vm2998_vm1  ;;  %1690 = vmatpush1.bf16.msk.msra.mxu1 %vm1689_vm13, %v1688_v2  ;;  %vm3007_vm14 = vcmp.le.s32.totalorder %v2099_v42, 14  ;;  %v603_v23 = vsel %vm2903_vm11, %v598_v18, %v592_v8  ;;  %v600_v25 = vsel %vm2903_vm11, %v596_v20, %v598_v18  ;;  %v601_v26 = vsel %vm2903_vm11, %v594_v7, %v596_v20 }
  0xc3   : > { %v3001_v12 = vsel %vm2420_vm7, 4294967295, %v3000_v12  ;;  %vm2430_vm15 = vmand %vm3004_vm12, %vm3003_vm4  ;;  %vm698_vm13 = vcmask 588800   ;;  %v602_v30 = vsel %vm2903_vm11, %v592_v8, %v594_v7  ;;  %1623 = vmatprep.subr.msk.mxu0 %vm2420_vm7, %v601_v26 }
  0xc4   : > { %3002 = vst [vmem:[#allocation7_spill] sm:$0xff] %v3001_v12  ;;  %vm2439_vm8 = vmand %vm3007_vm14, %vm2980_vm2  ;;  %1641 = vmatprep.subr.msk.mxu1 %vm2430_vm15, %v603_v23 }
  0xc5   : > { %vm2447_vm12 = vmand %vm3010_vm10, %vm2982_vm3  ;;  %1624 = vmatpush1.msk.msra.mxu0 %vm2439_vm8, %v602_v30 }
  0xc6   : > { %v3012_v21 = vsel %vm2447_vm12, 4294967295, %v3011_v21  ;;  %1642 = vmatpush1.msk.msra.mxu1 %vm2447_vm12, %v600_v25  ;;  %1567 = vmatmul.mubr.msk.f32.vlgmr.msra.gmra.mrb[0].mxu0 %vm698_vm13, %v620_v27 }
  0xc7   : > { %3013 = vst [vmem:[#allocation8_spill] sm:$0xff] %v3012_v21  ;;  %1573 = vmatmul.mubr.msk.f32.vlgmr.msra.gmra.mrb[0].mxu1 %vm698_vm13, %v620_v27  ;;  %787 = vmatprep.mubr.f32.mxu0 %v2904_v22 }
  0xc8   : > { %888 = vmatprep.mubr.f32.mxu1 %v2904_v22 }
  0xca   : > { %1568 = vmatmul.mubr.msk.f32.gmra.mrb[2].mxu0 %vm698_vm13, %v621_v31  ;;  %v671_v17 = vpop.permute.xlu0 %670  ;;  %v676_v34 = vpop.permute.xlu1 %675 }
  0xcb   : > { %1574 = vmatmul.mubr.msk.f32.gmra.mrb[2].mxu1 %vm698_vm13, %v621_v31  ;;  %793 = vmatprep.mubr.f32.mxu0 %v2904_v22 }
  0xcc   : > { %894 = vmatprep.mubr.f32.mxu1 %v2904_v22 }
  0xce   : > { %1569 = vmatmul.mubr.msk.f32.gmra.mrb[4].mxu0 %vm698_vm13, %v622_v33  ;;  %v681_v26 = vpop.permute.xlu1 %680 }
  0xcf   : > { %1575 = vmatmul.mubr.msk.f32.gmra.mrb[4].mxu1 %vm698_vm13, %v622_v33  ;;  %799 = vmatprep.mubr.f32.mxu0 %v2904_v22 }
  0xd0   : > { %900 = vmatprep.mubr.f32.mxu1 %v2904_v22 }
  0xd2   : > { %1570 = vmatmul.mubr.msk.f32.gmra.mrb[6].mxu0 %vm698_vm13, %v623_v11 }
  0xd3   : > { %1576 = vmatmul.mubr.msk.f32.gmra.mrb[6].mxu1 %vm698_vm13, %v623_v11  ;;  %805 = vmatprep.mubr.f32.mxu0 %v2904_v22 }
  0xd4   : > { %906 = vmatprep.mubr.f32.mxu1 %v2904_v22 }
  0xd6   : > { %1571 = vmatmul.mubr.msk.f32.gmra.mrb[8].mxu0 %vm698_vm13, %v624_v14 }
  0xd7   : > { %1577 = vmatmul.mubr.msk.f32.gmra.mrb[8].mxu1 %vm698_vm13, %v624_v14  ;;  %811 = vmatprep.mubr.f32.mxu0 %v2904_v22 }
  0xd8   : > { %912 = vmatprep.mubr.f32.mxu1 %v2904_v22 }
  0xda   : > { %1572 = vmatmul.mubr.msk.f32.gmra.mrb[10].mxu0 %vm698_vm13, %v625_v15 }
  0xdb   : > { %1578 = vmatmul.mubr.msk.f32.gmra.mrb[10].mxu1 %vm698_vm13, %v625_v15  ;;  %1094 = vmatprep.mubr.f32.mxu0 %v2904_v22 }
  0xdc   : > { %1213 = vmatprep.mubr.f32.mxu1 %v2904_v22 }
 0x199   : > { %v783_v37 = vpop.f32.mrb[0].mxu0 }
 0x19a   : > { %v884_v43 = vpop.f32.mrb[0].mxu1  ;;  %v784_v45 = vadd.f32 %v783_v37, %v671_v17  ;;  %v785_v51 = vpop.f32.mrb[1].mxu0 }
 0x19b   : > { %v885_v52 = vadd.f32 %v884_v43, %v671_v17  ;;  %v886_v55 = vpop.f32.mrb[1].mxu1  ;;  %v786_v56 = vadd.f32 %v785_v51, %v671_v17 }
 0x19c   : > { %v887_v57 = vadd.f32 %v886_v55, %v671_v17  ;;  %vm920_vm6 = vcmp.ge.f32.partialorder %v784_v45, 0.0  ;;  %v945_v60 = vmul.f32 %v2509_v39, %v784_v45 }
 0x19d   : > { %vm922_vm9 = vcmp.ge.f32.partialorder %v885_v52, 0.0  ;;  %v947_v61 = vmul.f32 %v2509_v39, %v885_v52  ;;  %vm921_vm14 = vcmp.ge.f32.partialorder %v786_v56, 0.0  ;;  %v946_v63 = vmul.f32 %v2509_v39, %v786_v56  ;;  %v789_v1 = vpop.f32.mrb[2].mxu0 }
 0x19e   : > { %v948_v0 = vmul.f32 %v2509_v39, %v887_v57  ;;  %v890_v2 = vpop.f32.mrb[2].mxu1  ;;  %v2515_v4 = vsel %vm920_vm6, %v784_v45, %v945_v60  ;;  %vm923_vm10 = vcmp.ge.f32.partialorder %v887_v57, 0.0  ;;  %v790_v5 = vadd.f32 %v789_v1, %v676_v34  ;;  %v791_v7 = vpop.f32.mrb[3].mxu0 }
 0x19f   : > { %v891_v6 = vadd.f32 %v890_v2, %v676_v34  ;;  %v892_v8 = vpop.f32.mrb[3].mxu1  ;;  %v2517_v18 = vsel %vm922_vm9, %v885_v52, %v947_v61  ;;  %v792_v20 = vadd.f32 %v791_v7, %v676_v34  ;;  %v2519_v25 = vsel %vm921_vm14, %v786_v56, %v946_v63  ;;  %v686_v61 = vpop.permute.xlu0 %685 }
 0x1a0   : > { %v893_v23 = vadd.f32 %v892_v8, %v676_v34  ;;  %vm924_vm13 = vcmp.ge.f32.partialorder %v790_v5, 0.0  ;;  %v949_v27 = vmul.f32 %v2509_v39, %v790_v5  ;;  %v972_v15 = vsel %vm923_vm10, %v887_v57, %v948_v0 }
 0x1a1   : > { %vm926_vm11 = vcmp.ge.f32.partialorder %v891_v6, 0.0  ;;  %v951_v30 = vmul.f32 %v2509_v39, %v891_v6  ;;  %v950_v31 = vmul.f32 %v2509_v39, %v792_v20  ;;  %v795_v11 = vpop.f32.mrb[4].mxu0 }
 0x1a2   : > { %v952_v33 = vmul.f32 %v2509_v39, %v893_v23  ;;  %v896_v14 = vpop.f32.mrb[4].mxu1  ;;  %v973_v17 = vsel %vm924_vm13, %v790_v5, %v949_v27  ;;  %v796_v37 = vadd.f32 %v795_v11, %v681_v26  ;;  %v797_v45 = vpop.f32.mrb[5].mxu0  ;;  %vm927_vm9 = vcmp.ge.f32.partialorder %v893_v23, 0.0 }
 0x1a3   : > { %v975_v34 = vsel %vm926_vm11, %v891_v6, %v951_v30  ;;  %v897_v43 = vadd.f32 %v896_v14, %v681_v26  ;;  %v898_v51 = vpop.f32.mrb[5].mxu1  ;;  %v1693_v52 = vpack.c.bf16 %v973_v17, %v2515_v4  ;;  %v798_v56 = vadd.f32 %v797_v45, %v681_v26  ;;  %v691_v14 = vpop.permute.xlu1 %690 }
 0x1a4   : > { %v1705_v55 = vpack.c.bf16 %v975_v34, %v2517_v18  ;;  %v2528_v60 = vadd.f32 %v898_v51, %v681_v26  ;;  %vm928_vm14 = vcmp.ge.f32.partialorder %v796_v37, 0.0  ;;  %v953_v63 = vmul.f32 %v2509_v39, %v796_v37  ;;  %v696_v22 = vpop.permute.xlu0 %695 }
 0x1a5   : > { %vm930_vm6 = vcmp.ge.f32.partialorder %v897_v43, 0.0  ;;  %v955_v57 = vmul.f32 %v2509_v39, %v897_v43  ;;  %v954_v0 = vmul.f32 %v2509_v39, %v798_v56  ;;  %v801_v1 = vpop.f32.mrb[6].mxu0  ;;  %vm3014_vm13 = vcmp.ge.f32.partialorder %v792_v20, 0.0 }
 0x1a6   : > { %v902_v2 = vpop.f32.mrb[6].mxu1  ;;  %v2534_v4 = vsel %vm928_vm14, %v796_v37, %v953_v63  ;;  %v956_v5 = vmul.f32 %v2509_v39, %v2528_v60  ;;  %v802_v6 = vadd.f32 %v801_v1, %v686_v61  ;;  %v803_v8 = vpop.f32.mrb[7].mxu0  ;;  %v974_v30 = vsel %vm3014_vm13, %v792_v20, %v950_v31 }
 0x1a7   : > { %v903_v7 = vadd.f32 %v902_v2, %v686_v61  ;;  %v904_v18 = vpop.f32.mrb[7].mxu1  ;;  %v804_v26 = vadd.f32 %v803_v8, %v686_v61  ;;  %v976_v11 = vsel %vm927_vm9, %v893_v23, %v952_v33  ;;  %v2545_v37 = vsel %vm930_vm6, %v897_v43, %v955_v57 }
 0x1a8   : > { %v2538_v27 = vadd.f32 %v904_v18, %v686_v61  ;;  %vm932_vm10 = vcmp.ge.f32.partialorder %v802_v6, 0.0  ;;  %v957_v17 = vmul.f32 %v2509_v39, %v802_v6  ;;  %v1691_v33 = vpack.c.bf16 %v974_v30, %v2519_v25 }
 0x1a9   : > { %vm934_vm14 = vcmp.ge.f32.partialorder %v903_v7, 0.0  ;;  %v959_v34 = vmul.f32 %v2509_v39, %v903_v7  ;;  %vm933_vm11 = vcmp.ge.f32.partialorder %v804_v26, 0.0  ;;  %v958_v45 = vmul.f32 %v2509_v39, %v804_v26  ;;  %v807_v61 = vpop.f32.mrb[8].mxu0 }
 0x1aa   : > { %v960_v51 = vmul.f32 %v2509_v39, %v2538_v27  ;;  %v908_v20 = vpop.f32.mrb[8].mxu1  ;;  %v981_v31 = vsel %vm932_vm10, %v802_v6, %v957_v17  ;;  %v1703_v63 = vpack.c.bf16 %v976_v11, %v972_v15  ;;  %v809_v1 = vpop.f32.mrb[9].mxu0  ;;  %v808_v57 = vadd.f32 %v807_v61, %v691_v14  ;;  %1692 = vmatprep.subr.bf16.mxu0 %v1691_v33 }
 0x1ab   : > { %v983_v23 = vsel %vm934_vm14, %v903_v7, %v959_v34  ;;  %v910_v2 = vpop.f32.mrb[9].mxu1  ;;  %v1697_v8 = vpack.c.bf16 %v981_v31, %v2534_v4  ;;  %v909_v18 = vadd.f32 %v908_v20, %v691_v14  ;;  %v810_v21 = vadd.f32 %v809_v1, %v691_v14  ;;  %1694 = vmatpush1.bf16.msra.mxu0 %v1693_v52 }
 0x1ac   : > { %v1709_v43 = vpack.c.bf16 %v983_v23, %v2545_v37  ;;  %1704 = vmatprep.subr.bf16.mxu1 %v1703_v63  ;;  %v911_v12 = vadd.f32 %v910_v2, %v691_v14  ;;  %vm3015_vm9 = vcmp.ge.f32.partialorder %v798_v56, 0.0  ;;  %vm936_vm10 = vcmp.ge.f32.partialorder %v808_v57, 0.0 }
 0x1ad   : > { %v978_v6 = vsel %vm3015_vm9, %v798_v56, %v954_v0  ;;  %1706 = vmatpush1.bf16.msra.mxu1 %v1705_v55  ;;  %v961_v25 = vmul.f32 %v2509_v39, %v808_v57  ;;  %vm938_vm13 = vcmp.ge.f32.partialorder %v909_v18, 0.0  ;;  %v963_v15 = vmul.f32 %v2509_v39, %v909_v18  ;;  %v813_v4 = vpop.f32.mrb[10].mxu0 }
 0x1ae   : > { %v914_v7 = vpop.f32.mrb[10].mxu1  ;;  %v962_v30 = vmul.f32 %v2509_v39, %v810_v21  ;;  %v964_v11 = vmul.f32 %v2509_v39, %v911_v12  ;;  %v815_v17 = vpop.f32.mrb[11].mxu0  ;;  %v814_v52 = vadd.f32 %v813_v4, %v696_v22  ;;  %v982_v61 = vsel %vm933_vm11, %v804_v26, %v958_v45 }
 0x1af   : > { %v916_v14 = vpop.f32.mrb[11].mxu1  ;;  %v985_v34 = vsel %vm936_vm10, %v808_v57, %v961_v25  ;;  %v987_v56 = vsel %vm938_vm13, %v909_v18, %v963_v15  ;;  %v915_v55 = vadd.f32 %v914_v7, %v696_v22  ;;  %v816_v0 = vadd.f32 %v815_v17, %v696_v22  ;;  %v999_v7 = vld [vmem:[%s2863_s5 + $0x30] sm:$0xff] }
 0x1b0   : > { %v917_v37 = vadd.f32 %v916_v14, %v696_v22  ;;  %vm3016_vm9 = vcmp.ge.f32.partialorder %v2528_v60, 0.0  ;;  %vm940_vm14 = vcmp.ge.f32.partialorder %v814_v52, 0.0  ;;  %v965_v31 = vmul.f32 %v2509_v39, %v814_v52 }
 0x1b1   : > { %v980_v20 = vsel %vm3016_vm9, %v2528_v60, %v956_v5  ;;  %vm942_vm6 = vcmp.ge.f32.partialorder %v915_v55, 0.0  ;;  %v967_v23 = vmul.f32 %v2509_v39, %v915_v55  ;;  %vm941_vm12 = vcmp.ge.f32.partialorder %v816_v0, 0.0 }
 0x1b2   : > { %v966_v33 = vmul.f32 %v2509_v39, %v816_v0  ;;  %vm943_vm10 = vcmp.ge.f32.partialorder %v917_v37, 0.0  ;;  %v968_v63 = vmul.f32 %v2509_v39, %v917_v37  ;;  %v989_v1 = vsel %vm940_vm14, %v814_v52, %v965_v31 }
 0x1b3   : > { %v991_v22 = vsel %vm942_vm6, %v915_v55, %v967_v23  ;;  %v1695_v2 = vpack.c.bf16 %v982_v61, %v978_v6  ;;  %vm3017_vm11 = vcmp.ge.f32.partialorder %v2538_v27, 0.0  ;;  %v1701_v60 = vpack.c.bf16 %v989_v1, %v985_v34  ;;  %v998_v6 = vld [vmem:[%s2863_s5 + $0x28] sm:$0xff] }
 0x1b4   : > { %v984_v26 = vsel %vm3017_vm11, %v2538_v27, %v960_v51  ;;  %v1713_v5 = vpack.c.bf16 %v991_v22, %v987_v56  ;;  %vm3018_vm13 = vcmp.ge.f32.partialorder %v810_v21, 0.0  ;;  %v990_v18 = vsel %vm941_vm12, %v816_v0, %v966_v33  ;;  %v993_v27 = vld [vmem:[%s2863_s5] sm:$0xff]  ;;  %v995_v51 = vld [vmem:[%s2863_s5 + $0x10] sm:$0xff] }
 0x1b5   : > { %v1707_v45 = vpack.c.bf16 %v984_v26, %v980_v20  ;;  %1696 = vmatprep.subr.bf16.mxu0 %v1695_v2  ;;  %v986_v57 = vsel %vm3018_vm13, %v810_v21, %v962_v30  ;;  %vm3019_vm9 = vcmp.ge.f32.partialorder %v911_v12, 0.0  ;;  %v992_v15 = vsel %vm943_vm10, %v917_v37, %v968_v63  ;;  %v994_v21 = vld [vmem:[%s2863_s5 + $0x8] sm:$0xff]  ;;  %v1000_v30 = vld [vmem:[%s2863_s5 + $0x38] sm:$0xff] }
 0x1b6   : > { %v988_v25 = vsel %vm3019_vm9, %v911_v12, %v964_v11  ;;  %1698 = vmatpush1.bf16.msra.mxu0 %v1697_v8  ;;  %v1699_v39 = vpack.c.bf16 %v990_v18, %v986_v57  ;;  %vm1002_vm6 = vcmask 392192   ;;  %v3020_v12 = vmov 0.0   ;;  %v996_v8 = vld [vmem:[%s2863_s5 + $0x18] sm:$0xff]  ;;  %v1001_v11 = vld [vmem:[%s2863_s5 + $0x40] sm:$0xff] }
 0x1b7   : > { %1708 = vmatprep.subr.bf16.mxu1 %v1707_v45  ;;  %v1711_v4 = vpack.c.bf16 %v992_v15, %v988_v25  ;;  %vm3024_vm12 = vcmp.lt.s32.totalorder %v2090_v32, 17  ;;  %vm3028_vm13 = vnez %v2918_v53  ;;  %vm3029_vm9 = vcmp.lt.s32.totalorder %v2090_v32, 16 }
 0x1b8   : > { %1710 = vmatpush1.bf16.msra.mxu1 %v1709_v43  ;;  %1700 = vmatprep.subr.bf16.mxu0 %v1699_v39  ;;  %v997_v43 = vld [vmem:[%s2863_s5 + $0x20] sm:$0xff]  ;;  %vm3025_vm14 = vmmov %vm3024_vm12 }
 0x1b9   : > { %1712 = vmatprep.subr.bf16.mxu1 %v1711_v4  ;;  %vm3026_vm10 = vmmov %vm3024_vm12 }
 0x1ba   : > { %1702 = vmatpush1.bf16.msra.mxu0 %v1701_v60  ;;  %vm3027_vm11 = vmmov %vm3026_vm10 }
 0x1bc   : > { %1714 = vmatpush1.bf16.msra.mxu1 %v1713_v5 }
 0x1bd   : > { %1579 = vmatmul.mubr.msk.f32.vlgmr.msra.gmra.mrb[12].mxu0 %vm1002_vm6, %v993_v27 }
 0x1be   : > { %1100 = vmatprep.mubr.f32.mxu0 %v3020_v12 }
 0x1bf   : > { %1588 = vmatmul.mubr.msk.f32.vlgmr.msra.gmra.mrb[12].mxu1 %vm1002_vm6, %v993_v27 }
 0x1c0   : > { %1219 = vmatprep.mubr.f32.mxu1 %v3020_v12 }
 0x1c1   : > { %1580 = vmatmul.mubr.msk.f32.gmra.mrb[14].mxu0 %vm1002_vm6, %v994_v21 }
 0x1c2   : > { %1106 = vmatprep.mubr.f32.mxu0 %v3020_v12 }
 0x1c3   : > { %1589 = vmatmul.mubr.msk.f32.gmra.mrb[14].mxu1 %vm1002_vm6, %v994_v21 }
 0x1c4   : > { %1225 = vmatprep.mubr.f32.mxu1 %v3020_v12 }
 0x1c5   : > { %1581 = vmatmul.mubr.msk.f32.gmra.mrb[16].mxu0 %vm1002_vm6, %v995_v51 }
 0x1c6   : > { %1112 = vmatprep.mubr.f32.mxu0 %v3020_v12 }
 0x1c7   : > { %1590 = vmatmul.mubr.msk.f32.gmra.mrb[16].mxu1 %vm1002_vm6, %v995_v51 }
 0x1c8   : > { %1231 = vmatprep.mubr.f32.mxu1 %v3020_v12 }
 0x1c9   : > { %1582 = vmatmul.mubr.msk.f32.gmra.mrb[18].mxu0 %vm1002_vm6, %v996_v8 }
 0x1ca   : > { %1118 = vmatprep.mubr.f32.mxu0 %v3020_v12 }
 0x1cb   : > { %1591 = vmatmul.mubr.msk.f32.gmra.mrb[18].mxu1 %vm1002_vm6, %v996_v8 }
 0x1cc   : > { %1237 = vmatprep.mubr.f32.mxu1 %v3020_v12 }
 0x1cd   : > { %1583 = vmatmul.mubr.msk.f32.gmra.mrb[20].mxu0 %vm1002_vm6, %v997_v43 }
 0x1ce   : > { %1124 = vmatprep.mubr.f32.mxu0 %v3020_v12 }
 0x1cf   : > { %1592 = vmatmul.mubr.msk.f32.gmra.mrb[20].mxu1 %vm1002_vm6, %v997_v43 }
 0x1d0   : > { %1243 = vmatprep.mubr.f32.mxu1 %v3020_v12 }
 0x1d1   : > { %1584 = vmatmul.mubr.msk.f32.gmra.mrb[22].mxu0 %vm1002_vm6, %v998_v6 }
 0x1d2   : > { %1130 = vmatprep.mubr.f32.mxu0 %v3020_v12 }
 0x1d3   : > { %1593 = vmatmul.mubr.msk.f32.gmra.mrb[22].mxu1 %vm1002_vm6, %v998_v6 }
 0x1d4   : > { %1249 = vmatprep.mubr.f32.mxu1 %v3020_v12 }
 0x1d5   : > { %1585 = vmatmul.mubr.msk.f32.gmra.mrb[24].mxu0 %vm1002_vm6, %v999_v7 }
 0x1d6   : > { %1136 = vmatprep.mubr.f32.mxu0 %v3020_v12 }
 0x1d7   : > { %1594 = vmatmul.mubr.msk.f32.gmra.mrb[24].mxu1 %vm1002_vm6, %v999_v7 }
 0x1d8   : > { %1255 = vmatprep.mubr.f32.mxu1 %v3020_v12 }
 0x1d9   : > { %1586 = vmatmul.mubr.msk.f32.gmra.mrb[26].mxu0 %vm1002_vm6, %v1000_v30 }
 0x1da   : > { %1142 = vmatprep.mubr.f32.mxu0 %v3020_v12 }
 0x1db   : > { %1595 = vmatmul.mubr.msk.f32.gmra.mrb[26].mxu1 %vm1002_vm6, %v1000_v30 }
 0x1dc   : > { %1261 = vmatprep.mubr.f32.mxu1 %v3020_v12 }
 0x1dd   : > { %1587 = vmatmul.mubr.msk.f32.gmra.mrb[28].mxu0 %vm1002_vm6, %v1001_v11 }
 0x1df   : > { %1596 = vmatmul.mubr.msk.f32.gmra.mrb[28].mxu1 %vm1002_vm6, %v1001_v11  ;;  %v2673_v11 = vpop.permute.xlu1 %1431  ;;  %vm3030_vm6 = vnez %v2932_v9 }
 0x290   : > { %v1096_v17 = vpop.f32.mrb[12].mxu0 }
 0x291   : > { %1268 = vrot.lane.b32.xlu1 %v1096_v17, %s1921_s23  ;;  %v1098_v14 = vpop.f32.mrb[13].mxu0 }
 0x292   : > { %v1215_v34 = vpop.f32.mrb[12].mxu1  ;;  %1270 = vrot.lane.b32.xlu0 %v1098_v14, %s1921_s23 }
 0x293   : > { %v1217_v56 = vpop.f32.mrb[13].mxu1 }
 0x294   : > { %v1102_v52 = vpop.f32.mrb[14].mxu0 }
 0x295   : > { %1272 = vrot.lane.b32.xlu1 %v1215_v34, %s1921_s23  ;;  %v1104_v55 = vpop.f32.mrb[15].mxu0 }
 0x296   : > { %v1221_v0 = vpop.f32.mrb[14].mxu1  ;;  %1274 = vrot.lane.b32.xlu0 %v1217_v56, %s1921_s23  ;;  %s3022_s23 = smov 112  }
 0x297   : > { %v1223_v37 = vpop.f32.mrb[15].mxu1 }
 0x298   : > { %v1108_v61 = vpop.f32.mrb[16].mxu0 }
 0x299   : > { %1288 = vrot.lane.b32.xlu1 %v1102_v52, %s1920_s22  ;;  %v1110_v20 = vpop.f32.mrb[17].mxu0 }
 0x29a   : > { %v1227_v31 = vpop.f32.mrb[16].mxu1  ;;  %1290 = vrot.lane.b32.xlu0 %v1104_v55, %s1920_s22 }
 0x29b   : > { %v1229_v23 = vpop.f32.mrb[17].mxu1 }
 0x29c   : > { %v1114_v33 = vpop.f32.mrb[18].mxu0 }
 0x29d   : > { %1292 = vrot.lane.b32.xlu1 %v1221_v0, %s1920_s22  ;;  %v1116_v63 = vpop.f32.mrb[19].mxu0 }
 0x29e   : > { %v1233_v1 = vpop.f32.mrb[18].mxu1  ;;  %1294 = vrot.lane.b32.xlu0 %v1223_v37, %s1920_s22  ;;  %s3021_s22 = smov 113  }
 0x29f   : > { %v1235_v22 = vpop.f32.mrb[19].mxu1 }
 0x2a0   : > { %v2641_v2 = vpop.f32.mrb[20].mxu0 }
 0x2a1   : > { %1308 = vrot.lane.b32.xlu1 %v1108_v61, %s1922_s24  ;;  %v2644_v26 = vpop.f32.mrb[21].mxu0 }
 0x2a2   : > { %v2646_v60 = vpop.f32.mrb[20].mxu1  ;;  %1310 = vrot.lane.b32.xlu0 %v1110_v20, %s1922_s24 }
 0x2a3   : > { %v2649_v5 = vpop.f32.mrb[21].mxu1 }
 0x2a4   : > { %v1126_v45 = vpop.f32.mrb[22].mxu0 }
 0x2a5   : > { %1312 = vrot.lane.b32.xlu1 %v1227_v31, %s1922_s24  ;;  %v1128_v57 = vpop.f32.mrb[23].mxu0 }
 0x2a6   : > { %v1245_v18 = vpop.f32.mrb[22].mxu1  ;;  %1314 = vrot.lane.b32.xlu0 %v1229_v23, %s1922_s24  ;;  %s3023_s24 = smov 111  }
 0x2a7   : > { %v1247_v25 = vpop.f32.mrb[23].mxu1 }
 0x2a8   : > { %v1132_v15 = vpop.f32.mrb[24].mxu0 }
 0x2a9   : > { %1328 = vrot.lane.b32.xlu1 %v1114_v33, %s1923_s25  ;;  %v1134_v39 = vpop.f32.mrb[25].mxu0 }
 0x2aa   : > { %v1251_v4 = vpop.f32.mrb[24].mxu1  ;;  %1330 = vrot.lane.b32.xlu0 %v1116_v63, %s1923_s25 }
 0x2ab   : > { %v1253_v27 = vpop.f32.mrb[25].mxu1 }
 0x2ac   : > { %v1138_v12 = vpop.f32.mrb[26].mxu0 }
 0x2ad   : > { %1332 = vrot.lane.b32.xlu1 %v1233_v1, %s1923_s25  ;;  %v1140_v21 = vpop.f32.mrb[27].mxu0 }
 0x2ae   : > { %v1257_v51 = vpop.f32.mrb[26].mxu1  ;;  %1334 = vrot.lane.b32.xlu0 %v1235_v22, %s1923_s25  ;;  %s287_s25 = sand.u32 1, %s1910_s27  }
 0x2af   : > { %v1259_v8 = vpop.f32.mrb[27].mxu1  ;;  %s1473_s16 = scalar_lea.sflag [#allocation5], %s287_s25 }
 0x2b0   : > { %v1144_v43 = vpop.f32.mrb[28].mxu0 }
 0x2b1   : > { %1348 = vrot.lane.b32.xlu1 %v1126_v45, %s1924_s30  ;;  %v1146_v6 = vpop.f32.mrb[29].mxu0 }
 0x2b2   : > { %v1263_v7 = vpop.f32.mrb[28].mxu1  ;;  %1350 = vrot.lane.b32.xlu0 %v1128_v57, %s1924_s30 }
 0x2b3   : > { %v1265_v30 = vpop.f32.mrb[29].mxu1 }
 0x2b5   : > { %1352 = vrot.lane.b32.xlu1 %v1245_v18, %s1924_s30 }
 0x2b6   : > { %1354 = vrot.lane.b32.xlu0 %v1247_v25, %s1924_s30  ;;  %s1562_s30 = sshll.u32 %s287_s25, 4 }
 0x2b7   : > { %s289_s14 = scalar_lea.vmem [#allocation4], %s1562_s30 }
 0x2b8   : > { %s1487_s19 = sshll.u32 %s289_s14, 4  ;;  %s2818_s19 = int_to_ptr.vmem [resolvable:$true] %s1487_s19 }
 0x2b9   : > { %1368 = vrot.lane.b32.xlu1 %v1132_v15, %s3021_s22  ;;  %s1856_s4 = scalar_lea.vmem %s2818_s19, 256  ;;  %p1863_p0 = scmp.lt.s32.totalorder %s2818_s19, %s1861_s18 }
 0x2ba   : > { %1370 = vrot.lane.b32.xlu0 %v1134_v39, %s3021_s22  ;;  %p1857_p11 = scmp.ne.s32.totalorder %s2818_s19, %s1856_s4  ;;  %p1864_p1 = scmp.lt.s32.totalorder %s1862_s9, %s1856_s4 }
 0x2bc   : > { %p1858_p12 = pnand %p1857_p11, %p2012_p5  ;;  %p1865_p2 = por %p1864_p1, %p1863_p0 }
 0x2bd   : > { %1372 = vrot.lane.b32.xlu1 %v1251_v4, %s3021_s22 }
 0x2be   : > { %1374 = vrot.lane.b32.xlu0 %v1253_v27, %s3021_s22  ;;  %p1859_p13 = pneg %p1858_p12 }
 0x2c0   : > { %p1866_p3 = pnand %p1865_p2, %p1859_p13 }
 0x2c1   : > { %1390 = vrot.lane.b32.xlu1 %v1140_v21, %s3022_s23 }
 0x2c2   : > { %1388 = vrot.lane.b32.xlu0 %v1138_v12, %s3022_s23 }
 0x2c5   : > { %1394 = vrot.lane.b32.xlu1 %v1259_v8, %s3022_s23 }
 0x2c6   : > { %1392 = vrot.lane.b32.xlu0 %v1257_v51, %s3022_s23 }
 0x2c9   : > { %1410 = vrot.lane.b32.xlu1 %v1146_v6, %s3023_s24 }
 0x2ca   : > { %1408 = vrot.lane.b32.xlu0 %v1144_v43, %s3023_s24 }
 0x2cd   : > { %1414 = vrot.lane.b32.xlu1 %v1265_v30, %s3023_s24 }
 0x2ce   : > { %1412 = vrot.lane.b32.xlu0 %v1263_v7, %s3023_s24 }
 0x303   : > { %v1269_v17 = vpop.permute.xlu1 %1268 }
 0x304   : > { %v1271_v14 = vpop.permute.xlu0 %1270 }
 0x305   : > { %v1278_v18 = vsel %vm3024_vm12, %v1269_v17, %v1271_v14  ;;  %vm3031_vm12 = vnez %v2920_v58 }
 0x306   : > { %v1281_v12 = vsel %vm3028_vm13, %v1278_v18, 0.0  ;;  %vm3035_vm13 = vmmov %vm3029_vm9 }
 0x307   : > { %v1273_v34 = vpop.permute.xlu1 %1272  ;;  %v1285_v30 = vadd.f32 %v1281_v12, %v2644_v26 }
 0x308   : > { %v1275_v56 = vpop.permute.xlu0 %1274  ;;  %v1277_v15 = vsel %vm3025_vm14, %v1271_v14, %v1273_v34  ;;  %vm3032_vm14 = vnez %v2922_v59 }
 0x309   : > { %v1276_v39 = vsel %vm3026_vm10, %v1273_v34, %v1275_v56  ;;  %v1279_v4 = vsel %vm3027_vm11, %v1275_v56, %v1269_v17  ;;  %v1282_v51 = vsel %vm3030_vm6, %v1277_v15, 0.0  ;;  %vm3033_vm10 = vmmov %vm3029_vm9  ;;  %vm3034_vm11 = vcmp.ge.s32.totalorder %v2096_v40, 1 }
 0x30a   : > { %v1280_v8 = vsel %vm3031_vm12, %v1279_v4, 0.0  ;;  %v1283_v43 = vsel %vm3032_vm14, %v1276_v39, 0.0  ;;  %vm3036_vm6 = vcmp.lt.s32.totalorder %v2090_v32, 15  ;;  %v1286_v34 = vadd.f32 %v1282_v51, %v2646_v60 }
 0x30b   : > { %v1289_v52 = vpop.permute.xlu1 %1288  ;;  %vm3037_vm12 = vmmov %vm3036_vm6  ;;  %v1284_v26 = vadd.f32 %v1280_v8, %v2641_v2  ;;  %v1287_v56 = vadd.f32 %v1283_v43, %v2649_v5  ;;  %vm3038_vm14 = vcmp.ge.s32.totalorder %v2099_v42, 1 }
 0x30c   : > { %v1291_v55 = vpop.permute.xlu0 %1290 }
 0x30d   : > { %v1298_v21 = vsel %vm3029_vm9, %v1289_v52, %v1291_v55 }
 0x30e   : > { %v1301_v53 = vsel %vm3034_vm11, %v1298_v21, 0.0  ;;  %vm3040_vm11 = vmmov %vm3036_vm6 }
 0x30f   : > { %v1293_v0 = vpop.permute.xlu1 %1292  ;;  %v1305_v18 = vadd.f32 %v1301_v53, %v1285_v30 }
 0x310   : > { %v1295_v37 = vpop.permute.xlu0 %1294  ;;  %v1297_v9 = vsel %vm3035_vm13, %v1291_v55, %v1293_v0  ;;  %vm3041_vm13 = vcmp.lt.s32.totalorder %v2090_v32, 1 }
 0x311   : > { %v1299_v6 = vsel %vm3033_vm10, %v1295_v37, %v1289_v52  ;;  %v1296_v58 = vsel %vm3029_vm9, %v1293_v0, %v1295_v37  ;;  %vm3039_vm10 = vmmov %vm3036_vm6  ;;  %vm3042_vm9 = vcmp.ge.s32.totalorder %v2118_v50, 1 }
 0x312   : > { %v1300_v52 = vsel %vm3038_vm14, %v1299_v6, 0.0  ;;  %v1302_v60 = vsel %vm3042_vm9, %v1297_v9, 0.0  ;;  %vm3045_vm14 = vnez %v2950_v38  ;;  %vm3049_vm9 = vnez %v2947_v35 }
 0x313   : > { %v1309_v61 = vpop.permute.xlu1 %1308  ;;  %v1304_v39 = vadd.f32 %v1300_v52, %v1284_v26  ;;  %v1306_v51 = vadd.f32 %v1302_v60, %v1286_v34 }
 0x314   : > { %v1311_v20 = vpop.permute.xlu0 %1310 }
 0x315   : > { %v1318_v59 = vsel %vm3036_vm6, %v1309_v61, %v1311_v20  ;;  %vm3043_vm6 = vcmp.ge.s32.totalorder %v2101_v44, 1 }
 0x316   : > { %v1303_v2 = vsel %vm3043_vm6, %v1296_v58, 0.0  ;;  %vm3050_vm6 = vcmp.lt.s32.totalorder %v2090_v32, 127 }
 0x317   : > { %v1313_v31 = vpop.permute.xlu1 %1312 }
 0x318   : > { %v1315_v23 = vpop.permute.xlu0 %1314  ;;  %v1317_v55 = vsel %vm3039_vm10, %v1311_v20, %v1313_v31  ;;  %vm3046_vm10 = vmmov %vm3041_vm13 }
 0x319   : > { %v1319_v14 = vsel %vm3037_vm12, %v1315_v23, %v1309_v61  ;;  %v1316_v0 = vsel %vm3040_vm11, %v1313_v31, %v1315_v23  ;;  %vm3044_vm12 = vnez %v2939_v19  ;;  %vm3047_vm11 = vmmov %vm3046_vm10  ;;  %v1322_v12 = vsel %vm2255_vm0, %v1317_v55, 0.0 }
 0x31a   : > { %v1321_v5 = vsel %vm3044_vm12, %v1318_v59, 0.0  ;;  %v1320_v15 = vsel %vm3045_vm14, %v1319_v14, 0.0  ;;  %v1323_v19 = vsel %vm3049_vm9, %v1316_v0, 0.0  ;;  %vm3051_vm12 = vnez %v2912_v46 }
 0x31b   : > { %v1329_v33 = vpop.permute.xlu1 %1328  ;;  %v1325_v8 = vadd.f32 %v1321_v5, %v1305_v18  ;;  %v1324_v43 = vadd.f32 %v1320_v15, %v1304_v39  ;;  %vm3052_vm14 = vnez %v2924_v62  ;;  %vm3053_vm0 = vnez %v2916_v48 }
 0x31c   : > { %v1331_v63 = vpop.permute.xlu0 %1330  ;;  %v1326_v6 = vadd.f32 %v1322_v12, %v1306_v51  ;;  %vm3058_vm9 = vcmp.lt.s32.totalorder %v2090_v32, 112 }
 0x31d   : > { %v1338_v31 = vsel %vm3046_vm10, %v1329_v33, %v1331_v63 }
 0x31f   : > { %v1333_v1 = vpop.permute.xlu1 %1332 }
 0x320   : > { %v1335_v22 = vpop.permute.xlu0 %1334  ;;  %v1337_v23 = vsel %vm3047_vm11, %v1331_v63, %v1333_v1 }
 0x321   : > { %v1339_v37 = vsel %vm3041_vm13, %v1335_v22, %v1329_v33  ;;  %vm3048_vm13 = vmmov %vm3046_vm10  ;;  %v1307_v33 = vadd.f32 %v1303_v2, %v1287_v56  ;;  %v1342_v49 = vsel %vm3052_vm14, %v1337_v23, 0.0  ;;  %vm3054_vm10 = vcmp.lt.s32.totalorder %v2090_v32, 113 }
 0x322   : > { %v1336_v4 = vsel %vm3048_vm13, %v1333_v1, %v1335_v22  ;;  %v1340_v38 = vsel %vm2109_vm5, %v1339_v37, 0.0  ;;  %v1341_v1 = vsel %vm3051_vm12, %v1338_v31, 0.0  ;;  %vm3055_vm5 = vmmov %vm3050_vm6  ;;  %v1346_v14 = vadd.f32 %v1342_v49, %v1326_v6  ;;  %v3078_v49 = vld [vmem:[#allocation8_spill] sm:$0xff] }
 0x323   : > { %v1349_v45 = vpop.permute.xlu1 %1348  ;;  %v1343_v35 = vsel %vm3053_vm0, %v1336_v4, 0.0  ;;  %v1327_v30 = vadd.f32 %v1323_v19, %v1307_v33  ;;  %v1344_v53 = vadd.f32 %v1340_v38, %v1324_v43  ;;  %vm3056_vm11 = vmmov %vm3055_vm5  ;;  %v1345_v59 = vadd.f32 %v1341_v1, %v1325_v8 }
 0x324   : > { %v1351_v57 = vpop.permute.xlu0 %1350  ;;  %vm3057_vm13 = vmmov %vm3055_vm5  ;;  %vm3063_vm0 = vcmp.le.s32.totalorder %v2099_v42, 14 }
 0x325   : > { %v1358_v21 = vsel %vm3050_vm6, %v1349_v45, %v1351_v57  ;;  %v1347_v34 = vadd.f32 %v1343_v35, %v1327_v30  ;;  %vm3059_vm6 = vnez %v2991_v41 }
 0x326   : > { %v1360_v9 = vsel %vm2980_vm2, %v1358_v21, 0.0  ;;  %vm3060_vm2 = vmmov %vm3054_vm10 }
 0x327   : > { %v1353_v25 = vpop.permute.xlu1 %1352  ;;  %v1364_v56 = vadd.f32 %v1360_v9, %v1344_v53  ;;  %vm3061_vm12 = vmmov %vm3060_vm2 }
 0x328   : > { %v1355_v27 = vpop.permute.xlu0 %1354  ;;  %v1357_v46 = vsel %vm3055_vm5, %v1351_v57, %v1353_v25  ;;  %vm3062_vm14 = vmmov %vm3060_vm2 }
 0x329   : > { %v1356_v62 = vsel %vm3056_vm11, %v1353_v25, %v1355_v27  ;;  %v1359_v48 = vsel %vm3057_vm13, %v1355_v27, %v1349_v45  ;;  %v1361_v52 = vsel %vm2998_vm1, %v1357_v46, 0.0  ;;  %vm3065_vm5 = vmmov %vm3058_vm9  ;;  %vm3067_vm1 = vnez %v2977_v24 }
 0x32a   : > { %v1362_v18 = vsel %vm2982_vm3, %v1356_v62, 0.0  ;;  %v1363_v41 = vsel %vm3003_vm4, %v1359_v48, 0.0  ;;  %vm3066_vm11 = vmmov %vm3065_vm5  ;;  %vm3068_vm3 = vnez %v2994_v54  ;;  %vm3069_vm4 = vnez %v2988_v36 }
 0x32b   : > { %v1369_v7 = vpop.permute.xlu1 %1368  ;;  %v1366_v60 = vadd.f32 %v1362_v18, %v1346_v14  ;;  %v1367_v2 = vadd.f32 %v1363_v41, %v1347_v34  ;;  %vm3070_vm13 = vcmp.le.s32.totalorder %v2101_v44, 14 }
 0x32c   : > { %v1371_v17 = vpop.permute.xlu0 %1370 }
 0x32d   : > { %v1378_v47 = vsel %vm3054_vm10, %v1369_v7, %v1371_v17  ;;  %vm3064_vm10 = vmmov %vm3058_vm9 }
 0x32e   : > { %v1380_v26 = vsel %vm3059_vm6, %v1378_v47, 0.0  ;;  %vm3072_vm6 = vcmp.le.s32.totalorder %v2118_v50, 14 }
 0x32f   : > { %v1373_v61 = vpop.permute.xlu1 %1372 }
 0x330   : > { %v1375_v20 = vpop.permute.xlu0 %1374  ;;  %v1377_v57 = vsel %vm3060_vm2, %v1371_v17, %v1373_v61  ;;  %v1384_v17 = vadd.f32 %v1380_v26, %v1364_v56  ;;  %vm3073_vm2 = vcmp.lt.s32.totalorder %v2090_v32, 111 }
 0x331   : > { %v1376_v25 = vsel %vm3061_vm12, %v1373_v61, %v1375_v20  ;;  %v1379_v45 = vsel %vm3062_vm14, %v1375_v20, %v1369_v7  ;;  %v1381_v29 = vsel %vm3067_vm1, %v1377_v57, 0.0  ;;  %v1365_v61 = vadd.f32 %v1361_v52, %v1345_v59  ;;  %vm3074_vm12 = vmmov %vm3073_vm2 }
 0x332   : > { %v1382_v10 = vsel %vm3068_vm3, %v1376_v25, 0.0  ;;  %v1383_v42 = vsel %vm3069_vm4, %v1379_v45, 0.0  ;;  %vm3075_vm14 = vmmov %vm3073_vm2 }
 0x333   : > { %v1391_v63 = vpop.permute.xlu1 %1390  ;;  %v1385_v36 = vadd.f32 %v1381_v29, %v1365_v61  ;;  %v1386_v31 = vadd.f32 %v1382_v10, %v1366_v60  ;;  %v1387_v23 = vadd.f32 %v1383_v42, %v1367_v2 }
 0x334   : > { %v1389_v22 = vpop.permute.xlu0 %1388 }
 0x335   : > { %v1398_v58 = vsel %vm3058_vm9, %v1389_v22, %v1391_v63  ;;  %vm3071_vm9 = vcmp.le.s32.totalorder %v2096_v40, 14 }
 0x336   : > { %v1400_v55 = vsel %vm3063_vm0, %v1398_v58, 0.0  ;;  %vm3076_vm0 = vmmov %vm3073_vm2 }
 0x337   : > { %v1395_v28 = vpop.permute.xlu1 %1394  ;;  %v1404_v5 = vadd.f32 %v1400_v55, %v1384_v17 }
 0x338   : > { %v1393_v27 = vpop.permute.xlu0 %1392  ;;  %v1399_v0 = vsel %vm3064_vm10, %v1395_v28, %v1389_v22 }
 0x339   : > { %v1396_v7 = vsel %vm3065_vm5, %v1393_v27, %v1395_v28  ;;  %v1397_v3 = vsel %vm3066_vm11, %v1391_v63, %v1393_v27  ;;  %v1403_v20 = vsel %vm3070_vm13, %v1399_v0, 0.0 }
 0x33a   : > { %v1401_v39 = vsel %vm3071_vm9, %v1397_v3, 0.0  ;;  %v1402_v24 = vsel %vm3072_vm6, %v1396_v7, 0.0  ;;  %v1407_v38 = vadd.f32 %v1403_v20, %v1387_v23 }
 0x33b   : > { %v1411_v37 = vpop.permute.xlu1 %1410  ;;  %v1405_v44 = vadd.f32 %v1401_v39, %v1385_v36  ;;  %v1406_v21 = vadd.f32 %v1402_v24, %v1386_v31 }
 0x33c   : > { %v1409_v15 = vpop.permute.xlu0 %1408 }
 0x33d   : > { %v1418_v54 = vsel %vm3073_vm2, %v1409_v15, %v1411_v37 }
 0x33e   : > { %v1420_v4 = vsel %vm2439_vm8, %v1418_v54, 0.0  ;;  %vm3079_vm8 = vnez %v3078_v49 }
 0x33f   : > { %v1424_v12 = vadd.f32 %v1420_v4, %v1404_v5  ;;  %v1415_v19 = vpop.permute.xlu1 %1414 }
 0x340   : > { %v1419_v40 = vsel %vm3074_vm12, %v1415_v19, %v1409_v15  ;;  %v1413_v51 = vpop.permute.xlu0 %1412 }
 0x341   : > { %v1434_v50 = vadd.f32 %v2673_v11, %v1424_v12  ;;  %v1423_v33 = vsel %vm2430_vm15, %v1419_v40, 0.0  ;;  %v1416_v8 = vsel %vm3075_vm14, %v1413_v51, %v1415_v19  ;;  %v1417_v16 = vsel %vm3076_vm0, %v1411_v37, %v1413_v51 }
 0x342   : > { %v1427_v43 = vadd.f32 %v1423_v33, %v1407_v38  ;;  %v1421_v1 = vsel %vm2420_vm7, %v1417_v16, 0.0  ;;  %v1422_v35 = vsel %vm3079_vm8, %v1416_v8, 0.0 }
 0x343   : > { %v1597_v47 = vmul.f32 -1.442695, %v1434_v50  ;;  %v1425_v22 = vadd.f32 %v1421_v1, %v1405_v44  ;;  %v1426_v6 = vadd.f32 %v1422_v35, %v1406_v21 }
 0x344   : > { %v1437_v30 = vadd.f32 %v2673_v11, %v1427_v43 }
 0x345   : > { %1840 = vpow2.f32 %v1597_v47  ;;  %v1435_v13 = vadd.f32 %v2673_v11, %v1425_v22  ;;  %v1436_v53 = vadd.f32 %v2673_v11, %v1426_v6 }
 0x346   : > { %v1600_v9 = vmul.f32 -1.442695, %v1437_v30 }
 0x347   : > { %v1598_v32 = vmul.f32 -1.442695, %v1435_v13  ;;  %v1599_v46 = vmul.f32 -1.442695, %v1436_v53 }
 0x348   : > { %1842 = vpow2.f32 %v1600_v9 }
 0x349   : > { %1844 = vpow2.f32 %v1598_v32 }
 0x34a   : > { %1846 = vpow2.f32 %v1599_v46 }
 0x34f   : > { %v1841_v62 = vpop.eup %1840 }
 0x350   : > { %v1450_v48 = vadd.f32 1.0, %v1841_v62 }
 0x352   : > { %v1843_v58 = vpop.eup %1842  ;;  %1848 = vrcp.f32 %v1450_v48 }
 0x353   : > { %v1845_v59 = vpop.eup %1844  ;;  %v1453_v14 = vadd.f32 1.0, %v1843_v58 }
 0x354   : > { %v1847_v34 = vpop.eup %1846  ;;  %v1451_v26 = vadd.f32 1.0, %v1845_v59 }
 0x355   : > { %1850 = vrcp.f32 %v1453_v14  ;;  %v1452_v28 = vadd.f32 1.0, %v1847_v34 }
 0x356   : > { %1852 = vrcp.f32 %v1451_v26 }
 0x357   : > { %1854 = vrcp.f32 %v1452_v28 }
 0x35c   : > { %v1849_v11 = vpop.eup %1848 }
 0x35f   : > { %v1851_v56 = vpop.eup %1850 }
 0x360   : > { %v1853_v57 = vpop.eup %1852 }
 0x361   : > { %v1855_v25 = vpop.eup %1854  ;;  %v1466_v45 = vcombine.low %v1849_v11, %v1853_v57 }
 0x362   : > { %v1467_v27 = vcombine.low %v1855_v25, %v1851_v56 }
 0x363   : > { %1470 = vst [vmem:[%s289_s14] sm:$0x77] %v1466_v45 }
 0x364   : > { %1471 = vst [vmem:[%s289_s14 + $0x8] sm:$0x77] %v1467_v27 }
 0x365   : > { %1869 = shalt.err (!%p1866_p3)
}
 0x366   : > { %s1870_s22 = scalar_lea.hbm %s2816_s15, 256  ;;  %s1874_s25 = scalar_lea.hbm %s2865_s7, 512 }
 0x367   : > { %p1871_p4 = scmp.ne.s32.totalorder %s2816_s15, %s1870_s22  ;;  %p1875_p9 = scmp.lt.u32.totalorder %s2816_s15, %s2865_s7 }
 0x368   : > { %p1876_p10 = scmp.lt.u32.totalorder %s1874_s25, %s1870_s22  ;;  %p1878_p12 = scmp.lt.u32.totalorder %s1870_s22, %s2816_s15 }
 0x369   : > { %p1872_p7 = pnand %p1871_p4, %p2012_p5 }
 0x36a   : > { %p1877_p11 = por %p1876_p10, %p1875_p9 }
 0x36b   : > { %p1873_p8 = pneg %p1872_p7 }
 0x36c   : > { %p1879_p13 = por %p1878_p12, %p1877_p11 }
 0x36e   : > { %p1880_p0 = pnand %p1879_p13, %p1873_p8 }
 0x370   : > { %1883 = shalt.err (!%p1880_p0)
}
 0x371   : > { %1715 = dma.vmem_to_hbm [thread:$0]  (%p2012_p5), %s2818_s19, 256, %s2816_s15, %s1473_s16  }
 0x372 PF: > { %p1721_p1 = scmp.ge.s32.totalorder %s1918_s29, 2  ;;  %s1499_s14 = sand.u32 1, %s1906_s26  }
 0x373   : > { %s1500_s20 = scalar_lea.sflag [#allocation5], %s1499_s14 }
 0x374   : > { %p1718_p2 = pnand %p1721_p1, %p2016_p6 }
 0x376   : > { %1901 = dma.done.wait (!%p1718_p2), %s1500_s20, 256  }
 0x377   : > { %1903 = vsyncadd (!%p1718_p2), %s1500_s20, 4294967040  ;;  %p18_p3 = scmp.ge.s32.totalorder %s1999_s8, 4   ;;  %s3080_s26 = smov %s1910_s27 }
 0x378   : > { %s3081_s27 = smov %s1914_s28  ;;  %s3082_s28 = smov %s2010_s11 }
 0x379   : > { %s3083_s29 = smov %s1999_s8  ;;  %20 = sbr.rel (!%p18_p3) target bundleno = 5 (0x5), region = 86 }
 0x380   :  { %1505 = vsyncpa [#allocation5], 1 }
 0x381   :  { %1507 = vsyncpa [#allocation5 + $0x1], 1 }

</bundles_post_ra>
